<compile_context>
chip_gen: v7x
topology: tpu7x:2x2x1
jax: 0.10.0
libtpu: 0.0.40
codegen_flags: <defaults>
</compile_context>

<pallas_src>
import jax
import jax.numpy as jnp
from jax.experimental import pallas as pl
from jax.experimental.pallas import tpu as pltpu

IN_DIM = 1024
HID_DIM = 768
OUT_DIM = 768


def pooler_kernel(x_ref, w_ref, b_ref, o_ref):
    # x arrives in its original dtype (f32).  Cast to bf16 on the VPU just
    # before the MXU -- free under the matmul, and avoids any wrapper-side
    # HBM pass over x.
    x = x_ref[...].astype(jnp.bfloat16)
    # (tb, 1024) bf16 @ (1024, 768) bf16 -> f32 accumulate on the MXU.
    y = jnp.dot(x, w_ref[...], preferred_element_type=jnp.float32)
    y = y + b_ref[...]                      # bias add in f32
    # tanh in f32 (safe on v5e: no bf16 EUP), cast to output dtype on store.
    o_ref[...] = jnp.tanh(y).astype(o_ref.dtype)


def fold_params(w1, b1, w2, b2, *, weight_dtype=jnp.bfloat16):
    """Fold Linear(1024,768) o Linear(768,768) into a single affine map.

    Weights are stored (in, out), so x@w1+b1 then @w2+b2 composes exactly as
    x @ (w1@w2) + (b1@w2 + b2).  Valid because there is NO activation between
    the two Linears in this module (Tanh is applied only at the end).
    Folding is done once in f32; weight cast to `weight_dtype` (bf16 for the
    fast MXU path, pass jnp.float32 for an accuracy-first variant); bias f32.
    """
    w1 = w1.astype(jnp.float32)
    w2 = w2.astype(jnp.float32)
    w = w1 @ w2                                               # (1024, 768)
    b = b1.astype(jnp.float32) @ w2 + b2.astype(jnp.float32)  # (1, 768)
    return w.astype(weight_dtype), b


def pooler_forward(x, w, b, *, tb=1024, out_dtype=jnp.bfloat16,
                   core_parallel=False):
    """x: (B, 1024) f32 (or bf16). w: (1024, 768) folded weight. b: (1, 768) f32.

    Returns (B, 768) in `out_dtype` (bf16 default; pass jnp.float32 for exact
    downstream compatibility).  Arbitrary B supported with no padding copy.
    """
    B = x.shape[0]
    assert x.shape[1] == IN_DIM

    # Effective batch tile: full tb for large B; for small B round up to a
    # multiple of 16 (bf16 output sublane packing -> unmasked stores).
    if B < tb:
        tb_eff = max(16, ((B + 15) // 16) * 16)
    else:
        tb_eff = tb
    grid = (pl.cdiv(B, tb_eff),)  # ragged last block handled by Pallas masking

    cost = pl.CostEstimate(
        flops=2 * B * IN_DIM * OUT_DIM,
        transcendentals=B * OUT_DIM,
        bytes_accessed=(x.size * x.dtype.itemsize
                        + w.size * w.dtype.itemsize
                        + b.size * b.dtype.itemsize
                        + B * OUT_DIM * jnp.dtype(out_dtype).itemsize),
    )

    # "parallel" is safe everywhere; CORE_PARALLEL shards batch tiles across
    # the 2 TensorCores on v7x (enable explicitly there).
    dim_sem = (pltpu.CORE_PARALLEL,) if core_parallel else ("parallel",)

    out = pl.pallas_call(
        pooler_kernel,
        out_shape=jax.ShapeDtypeStruct((B, OUT_DIM), out_dtype),
        grid_spec=pltpu.PrefetchScalarGridSpec(
            num_scalar_prefetch=0,
            grid=grid,
            in_specs=[
                # x tile: streamed, double-buffered by default.
                pl.BlockSpec((tb_eff, IN_DIM), lambda i: (i, 0)),
                # Folded weight: grid-invariant -> single-buffered, resident.
                pl.BlockSpec((IN_DIM, OUT_DIM), lambda i: (0, 0),
                             pipeline_mode=pl.Buffered(1)),
                # Folded bias: grid-invariant -> single-buffered.
                pl.BlockSpec((1, OUT_DIM), lambda i: (0, 0),
                             pipeline_mode=pl.Buffered(1)),
            ],
            out_specs=pl.BlockSpec((tb_eff, OUT_DIM), lambda i: (i, 0)),
        ),
        compiler_params=pltpu.CompilerParams(dimension_semantics=dim_sem),
        cost_estimate=cost,
    )(x, w, b)

    return out


def init_params(key):
    k1, k2, k3, k4 = jax.random.split(key, 4)
    # Same shapes as nn.Linear(1024,768) / nn.Linear(768,768), stored (in, out).
    s1 = 1.0 / jnp.sqrt(IN_DIM)
    s2 = 1.0 / jnp.sqrt(HID_DIM)
    w1 = jax.random.uniform(k1, (IN_DIM, HID_DIM), jnp.float32, -s1, s1)
    b1 = jax.random.uniform(k2, (1, HID_DIM), jnp.float32, -s1, s1)
    w2 = jax.random.uniform(k3, (HID_DIM, OUT_DIM), jnp.float32, -s2, s2)
    b2 = jax.random.uniform(k4, (1, OUT_DIM), jnp.float32, -s2, s2)
    return w1, b1, w2, b2


if __name__ == "__main__":
    key = jax.random.PRNGKey(0)
    kx, kp = jax.random.split(key)

    B = 16  # small demo batch; feature dims are fixed by the module (1024 -> 768)
    x = jax.random.normal(kx, (B, IN_DIM), jnp.float32)
    w1, b1, w2, b2 = init_params(kp)

    w_folded, b_folded = fold_params(w1, b1, w2, b2)

    out = pooler_forward(x, w_folded, b_folded)
    out = jax.block_until_ready(out)

    # Reference: the original two-Linear + Tanh module in f32.
    ref = jnp.tanh((x @ w1 + b1) @ w2 + b2)

    assert out.shape == (B, OUT_DIM)
    assert out.dtype == jnp.bfloat16
    max_err = float(jnp.max(jnp.abs(out.astype(jnp.float32) - ref)))
    # Tolerance covers bf16 folded weight + bf16 activations + bf16 output
    # (f32 MXU accumulation, f32 bias/tanh).
    assert max_err < 3e-2, f"max abs error {max_err}"

    print("KERNEL_OK")
</pallas_src>

<mosaic_0001>
module attributes {stable_mosaic.version = 11 : i64} {
  func.func @pooler_kernel(%arg0: i32, %arg1: memref<16x1024xf32, #tpu.memory_space<vmem>>, %arg2: memref<1024x768xbf16, #tpu.memory_space<vmem>>, %arg3: memref<1x768xf32, #tpu.memory_space<vmem>>, %arg4: memref<16x768xbf16, #tpu.memory_space<vmem>>) attributes {dimension_semantics = [#tpu.dimension_semantics<parallel>], iteration_bounds = array<i64: 1>, scalar_prefetch = 0 : i64, scratch_operands = 0 : i64, tpu.core_type = #tpu.core_type<tc>, window_params = [{transform_indices = @transform_0, window_bounds = array<i64: 16, 1024>}, {pipeline_mode = #tpu.pipeline_mode<synchronous>, transform_indices = @transform_1, window_bounds = array<i64: 1024, 768>}, {pipeline_mode = #tpu.pipeline_mode<synchronous>, transform_indices = @transform_2, window_bounds = array<i64: 1, 768>}, {transform_indices = @transform_3, window_bounds = array<i64: 16, 768>}]} {
    %c0 = arith.constant 0 : index
    %c0_0 = arith.constant 0 : index
    %0 = vector.load %arg1[%c0, %c0_0] : memref<16x1024xf32, #tpu.memory_space<vmem>>, vector<16x1024xf32>
    %1 = arith.truncf %0 : vector<16x1024xf32> to vector<16x1024xbf16>
    %c0_1 = arith.constant 0 : index
    %c0_2 = arith.constant 0 : index
    %2 = vector.load %arg2[%c0_1, %c0_2] : memref<1024x768xbf16, #tpu.memory_space<vmem>>, vector<1024x768xbf16>
    %cst = arith.constant dense<0.000000e+00> : vector<16x768xf32>
    %3 = tpu.matmul %1, %2, %cst {dimension_numbers = #tpu.dot_dimension_numbers<[1], [0], [0], [1], [0, 0, 1, 1], [], []>} : vector<16x1024xbf16>, vector<1024x768xbf16>, vector<16x768xf32> -> vector<16x768xf32>
    %c0_3 = arith.constant 0 : index
    %c0_4 = arith.constant 0 : index
    %4 = vector.load %arg3[%c0_3, %c0_4] : memref<1x768xf32, #tpu.memory_space<vmem>>, vector<1x768xf32>
    %5 = vector.broadcast %4 : vector<1x768xf32> to vector<16x768xf32>
    %6 = arith.addf %3, %5 : vector<16x768xf32>
    %7 = math.tanh %6 : vector<16x768xf32>
    %8 = arith.truncf %7 : vector<16x768xf32> to vector<16x768xbf16>
    %c0_5 = arith.constant 0 : index
    %c0_6 = arith.constant 0 : index
    %9 = vector.load %arg4[%c0_5, %c0_6] : memref<16x768xbf16, #tpu.memory_space<vmem>>, vector<16x768xbf16>
    tpu.vector_store %arg4[%c0_5, %c0_6], %8 {strides = array<i32>} : memref<16x768xbf16, #tpu.memory_space<vmem>>, vector<16x768xbf16>,
    return
  }
  func.func @transform_0(%arg0: i32) -> (i32, i32) {
    %c0_i32 = arith.constant 0 : i32
    %c0_i32_0 = arith.constant 0 : i32
    return %arg0, %c0_i32 : i32, i32
  }
  func.func @transform_1(%arg0: i32) -> (i32, i32) {
    %c0_i32 = arith.constant 0 : i32
    %c0_i32_0 = arith.constant 0 : i32
    %c0_i32_1 = arith.constant 0 : i32
    return %c0_i32, %c0_i32_0 : i32, i32
  }
  func.func @transform_2(%arg0: i32) -> (i32, i32) {
    %c0_i32 = arith.constant 0 : i32
    %c0_i32_0 = arith.constant 0 : i32
    %c0_i32_1 = arith.constant 0 : i32
    return %c0_i32, %c0_i32_0 : i32, i32
  }
  func.func @transform_3(%arg0: i32) -> (i32, i32) {
    %c0_i32 = arith.constant 0 : i32
    %c0_i32_0 = arith.constant 0 : i32
    return %arg0, %c0_i32 : i32, i32
  }
}

</mosaic_0001>

<bundles_post_ra>
// kernel: tpu_custom_call.1
= control target key start
LH: loop header
LB: loop body
LE: loop exit
PB: predicated region body
PF: predicated region fallthrough
CT: control target
= control target key end

     0   :  { %8 = vsyncpa [#allocation3], 0  ;;  %s4286_s0 = inlined_call_operand.hbm [shape: f32[16,1024], index: 0, kind: input, shape index: {}]   ;;  %s4287_s1 = inlined_call_operand.hbm [shape: bf16[1024,768], index: 1, kind: input, shape index: {}]   ;;  %s4288_s2 = inlined_call_operand.hbm [shape: f32[1,768], index: 2, kind: input, shape index: {}]   ;;  %s4289_s3 = inlined_call_operand.hbm [shape: bf16[16,768], index: 3, kind: output, shape index: {}]  }
   0x1   :  { %9 = vsyncpa [#allocation6], 0 }
   0x2   :  { %10 = vsyncpa [#allocation4], 0  ;;  %s4148_s12 = smov [#allocation5]   ;;  %s4054_s16 = scalar_lea.hbm %s4287_s1, 49152 }
   0x3   :  { %s28_s13 = sshll.u32 %s4148_s12, 4  ;;  %p4055_p0 = scmp.ne.s32.totalorder %s4287_s1, %s4054_s16  ;;  %s29_s13 = int_to_ptr.vmem [resolvable:$true] %s28_s13 }
   0x4   :  { %p4058_p1 = scmp.lt.u32.totalorder %s4054_s16, %s4287_s1 }
   0x6   :  { %p4060_p2 = pnand %p4058_p1, %p4055_p0 }
   0x8   :  { %4063 = shalt.err (!%p4060_p2)
}
   0x9   :  { %s4064_s21 = scalar_lea.vmem %s29_s13, 49152  ;;  %p4069_p4 = scmp.lt.s32.totalorder %s29_s13, %s29_s13 }
   0xa   :  { %p4065_p3 = scmp.ne.s32.totalorder %s29_s13, %s4064_s21  ;;  %p4070_p5 = scmp.lt.s32.totalorder %s4064_s21, %s4064_s21 }
   0xc   :  { %p4071_p6 = por %p4070_p5, %p4069_p4 }
   0xe   :  { %p4072_p7 = pnand %p4071_p6, %p4065_p3 }
  0x10   :  { %4075 = shalt.err (!%p4072_p7)
}
  0x11   :  { %s4149_s22 = smov 384   ;;  %s4150_s23 = smov 24  }
  0x12   :  { %34 = dma.hbm_to_vmem [thread:$0]  %s4287_s1, 49152, %s29_s13, [#allocation6], %s4149_s22, %s4149_s22, %s4150_s23  }
  0x13   :  { %s4151_s26 = smov [#allocation2]   ;;  %s4076_s30 = scalar_lea.hbm %s4286_s0, 2048 }
  0x14   :  { %s16_s27 = sshll.u32 %s4151_s26, 4  ;;  %p4077_p8 = scmp.ne.s32.totalorder %s4286_s0, %s4076_s30  ;;  %s17_s27 = int_to_ptr.vmem [resolvable:$true] %s16_s27 }
  0x15   :  { %p4080_p9 = scmp.lt.u32.totalorder %s4076_s30, %s4286_s0 }
  0x17   :  { %p4082_p10 = pnand %p4080_p9, %p4077_p8 }
  0x19   :  { %4085 = shalt.err (!%p4082_p10)
}
  0x1a   :  { %s4086_s8 = scalar_lea.vmem %s17_s27, 2048  ;;  %p4091_p12 = scmp.lt.s32.totalorder %s17_s27, %s17_s27 }
  0x1b   :  { %p4087_p11 = scmp.ne.s32.totalorder %s17_s27, %s4086_s8  ;;  %p4092_p13 = scmp.lt.s32.totalorder %s4086_s8, %s4086_s8 }
  0x1d   :  { %p4093_p0 = por %p4092_p13, %p4091_p12 }
  0x1f   :  { %p4094_p1 = pnand %p4093_p0, %p4087_p11 }
  0x21   :  { %4097 = shalt.err (!%p4094_p1)
}
  0x22   :  { %s4152_s1 = smov 1024   ;;  %s4153_s9 = smov 64  }
  0x23   :  { %22 = dma.hbm_to_vmem [thread:$0]  %s4286_s0, 2048, %s17_s27, [#allocation3], %s4152_s1, %s4152_s1, %s4153_s9  }
  0x24   :  { %s4154_s12 = smov [#allocation7]   ;;  %s4098_s16 = scalar_lea.hbm %s4288_s2, 96 }
  0x25   :  { %s41_s13 = sshll.u32 %s4154_s12, 4  ;;  %p4099_p2 = scmp.ne.s32.totalorder %s4288_s2, %s4098_s16  ;;  %s42_s13 = int_to_ptr.vmem [resolvable:$true] %s41_s13 }
  0x26   :  { %p4102_p3 = scmp.lt.u32.totalorder %s4098_s16, %s4288_s2 }
  0x28   :  { %p4104_p4 = pnand %p4102_p3, %p4099_p2 }
  0x2a   :  { %4107 = shalt.err (!%p4104_p4)
}
  0x2b   :  { %s4108_s21 = scalar_lea.vmem %s42_s13, 96  ;;  %p4113_p6 = scmp.lt.s32.totalorder %s42_s13, %s42_s13 }
  0x2c   :  { %p4109_p5 = scmp.ne.s32.totalorder %s42_s13, %s4108_s21  ;;  %p4114_p7 = scmp.lt.s32.totalorder %s4108_s21, %s4108_s21 }
  0x2e   :  { %p4115_p8 = por %p4114_p7, %p4113_p6 }
  0x30   :  { %p4116_p9 = pnand %p4115_p8, %p4109_p5 }
  0x32   :  { %4119 = shalt.err (!%p4116_p9)
}
  0x33   :  { %44 = dma.hbm_to_vmem [thread:$0]  %s4288_s2, 96, %s42_s13, [#allocation6]  }
  0x34   :  { %4142 = dma.done.wait [#allocation3], 2048  }
  0x35   :  { %4143 = vsyncadd [#allocation3], 4294965248 }
  0x36   :  { %4144 = dma.done.wait [#allocation6], 49248  }
  0x37   :  { %4145 = vsyncadd [#allocation6], 4294918048  ;;  %v3454_v0 = vld [vmem:[#allocation5 + $0x4] ss:$24 sps:$4 sm:$0xff]   ;;  %v3458_v2 = vld [vmem:[#allocation5] ss:$24 sps:$4 sm:$0xff]  }
  0x38   :  { %v3456_v1 = vld [vmem:[#allocation5 + $0x604] ss:$24 sps:$4 sm:$0xff]   ;;  %2414 = vmatprep.subr.bf16.mxu1 %v3454_v0  ;;  %v3459_v3 = vld [vmem:[#allocation5 + $0x600] ss:$24 sps:$4 sm:$0xff]   ;;  %v3460_v4 = vld [vmem:[#allocation5 + $0x34] ss:$24 sps:$4 sm:$0xff]  }
  0x39   :  { %2500 = vmatprep.subr.bf16.mxu0 %v3456_v1  ;;  %2415 = vmatpush1.bf16.msra.mxu1 %v3458_v2  ;;  %v3462_v5 = vld [vmem:[#allocation5 + $0x634] ss:$24 sps:$4 sm:$0xff]   ;;  %v3464_v6 = vld [vmem:[#allocation5 + $0x30] ss:$24 sps:$4 sm:$0xff]   ;;  %v3466_v8 = vld [vmem:[#allocation5 + $0x64] ss:$24 sps:$4 sm:$0xff]  }
  0x3a   :  { %2501 = vmatpush1.bf16.msra.mxu0 %v3459_v3  ;;  %2416 = vmatprep.subr.bf16.mxu1 %v3460_v4  ;;  %v3465_v7 = vld [vmem:[#allocation5 + $0x630] ss:$24 sps:$4 sm:$0xff]   ;;  %v3468_v9 = vld [vmem:[#allocation5 + $0x664] ss:$24 sps:$4 sm:$0xff]   ;;  %v3470_v10 = vld [vmem:[#allocation5 + $0x60] ss:$24 sps:$4 sm:$0xff]  }
  0x3b   :  { %2502 = vmatprep.subr.bf16.mxu0 %v3462_v5  ;;  %v3471_v11 = vld [vmem:[#allocation5 + $0x660] ss:$24 sps:$4 sm:$0xff]   ;;  %v3472_v12 = vld [vmem:[#allocation5 + $0x94] ss:$24 sps:$4 sm:$0xff]   ;;  %v3476_v14 = vld [vmem:[#allocation5 + $0x90] ss:$24 sps:$4 sm:$0xff]  }
  0x3c   :  { %v3474_v13 = vld [vmem:[#allocation5 + $0x694] ss:$24 sps:$4 sm:$0xff]   ;;  %v3477_v15 = vld [vmem:[#allocation5 + $0x690] ss:$24 sps:$4 sm:$0xff]   ;;  %v3478_v16 = vld [vmem:[#allocation5 + $0xc4] ss:$24 sps:$4 sm:$0xff]  }
  0x3d   :  { %2417 = vmatpush1.bf16.msra.mxu1 %v3464_v6  ;;  %v3480_v17 = vld [vmem:[#allocation5 + $0x6c4] ss:$24 sps:$4 sm:$0xff]   ;;  %v3482_v18 = vld [vmem:[#allocation5 + $0xc0] ss:$24 sps:$4 sm:$0xff]   ;;  %v3484_v20 = vld [vmem:[#allocation5 + $0xf4] ss:$24 sps:$4 sm:$0xff]  }
  0x3e   :  { %2503 = vmatpush1.bf16.msra.mxu0 %v3465_v7  ;;  %2418 = vmatprep.subr.bf16.mxu1 %v3466_v8  ;;  %v3483_v19 = vld [vmem:[#allocation5 + $0x6c0] ss:$24 sps:$4 sm:$0xff]   ;;  %v3486_v21 = vld [vmem:[#allocation5 + $0x6f4] ss:$24 sps:$4 sm:$0xff]   ;;  %v3488_v22 = vld [vmem:[#allocation5 + $0xf0] ss:$24 sps:$4 sm:$0xff]  }
  0x3f   :  { %2504 = vmatprep.subr.bf16.mxu0 %v3468_v9  ;;  %v3489_v23 = vld [vmem:[#allocation5 + $0x6f0] ss:$24 sps:$4 sm:$0xff]   ;;  %v3490_v24 = vld [vmem:[#allocation5 + $0x124] ss:$24 sps:$4 sm:$0xff]   ;;  %v3494_v26 = vld [vmem:[#allocation5 + $0x120] ss:$24 sps:$4 sm:$0xff]  }
  0x40   :  { %v3492_v25 = vld [vmem:[#allocation5 + $0x724] ss:$24 sps:$4 sm:$0xff]   ;;  %v3495_v27 = vld [vmem:[#allocation5 + $0x720] ss:$24 sps:$4 sm:$0xff]   ;;  %v3496_v28 = vld [vmem:[#allocation5 + $0x154] ss:$24 sps:$4 sm:$0xff]  }
  0x41   :  { %2419 = vmatpush1.bf16.msra.mxu1 %v3470_v10  ;;  %v3498_v29 = vld [vmem:[#allocation5 + $0x754] ss:$24 sps:$4 sm:$0xff]   ;;  %v3500_v30 = vld [vmem:[#allocation5 + $0x150] ss:$24 sps:$4 sm:$0xff]   ;;  %v3502_v32 = vld [vmem:[#allocation5 + $0x184] ss:$24 sps:$4 sm:$0xff]  }
  0x42   :  { %2505 = vmatpush1.bf16.msra.mxu0 %v3471_v11  ;;  %2420 = vmatprep.subr.bf16.mxu1 %v3472_v12  ;;  %v3501_v31 = vld [vmem:[#allocation5 + $0x750] ss:$24 sps:$4 sm:$0xff]   ;;  %v3504_v33 = vld [vmem:[#allocation5 + $0x784] ss:$24 sps:$4 sm:$0xff]   ;;  %v3506_v34 = vld [vmem:[#allocation5 + $0x180] ss:$24 sps:$4 sm:$0xff]  }
  0x43   :  { %2506 = vmatprep.subr.bf16.mxu0 %v3474_v13  ;;  %v3507_v35 = vld [vmem:[#allocation5 + $0x780] ss:$24 sps:$4 sm:$0xff]   ;;  %v3508_v36 = vld [vmem:[#allocation5 + $0x1b4] ss:$24 sps:$4 sm:$0xff]   ;;  %v3512_v38 = vld [vmem:[#allocation5 + $0x1b0] ss:$24 sps:$4 sm:$0xff]  }
  0x44   :  { %v3510_v37 = vld [vmem:[#allocation5 + $0x7b4] ss:$24 sps:$4 sm:$0xff]   ;;  %v3513_v39 = vld [vmem:[#allocation5 + $0x7b0] ss:$24 sps:$4 sm:$0xff]   ;;  %v3514_v40 = vld [vmem:[#allocation5 + $0x1e4] ss:$24 sps:$4 sm:$0xff]  }
  0x45   :  { %2421 = vmatpush1.bf16.msra.mxu1 %v3476_v14  ;;  %v3516_v41 = vld [vmem:[#allocation5 + $0x7e4] ss:$24 sps:$4 sm:$0xff]   ;;  %v3518_v42 = vld [vmem:[#allocation5 + $0x1e0] ss:$24 sps:$4 sm:$0xff]   ;;  %v3520_v44 = vld [vmem:[#allocation5 + $0x214] ss:$24 sps:$4 sm:$0xff]  }
  0x46   :  { %2507 = vmatpush1.bf16.msra.mxu0 %v3477_v15  ;;  %2422 = vmatprep.subr.bf16.mxu1 %v3478_v16  ;;  %v3519_v43 = vld [vmem:[#allocation5 + $0x7e0] ss:$24 sps:$4 sm:$0xff]   ;;  %v3522_v45 = vld [vmem:[#allocation5 + $0x814] ss:$24 sps:$4 sm:$0xff]   ;;  %v3524_v46 = vld [vmem:[#allocation5 + $0x210] ss:$24 sps:$4 sm:$0xff]  }
  0x47   :  { %2508 = vmatprep.subr.bf16.mxu0 %v3480_v17  ;;  %v3525_v47 = vld [vmem:[#allocation5 + $0x810] ss:$24 sps:$4 sm:$0xff]   ;;  %v3526_v50 = vld [vmem:[#allocation5 + $0x244] ss:$24 sps:$4 sm:$0xff]   ;;  %v3530_v56 = vld [vmem:[#allocation5 + $0x240] ss:$24 sps:$4 sm:$0xff]  }
  0x48   :  { %v55_v48 = vld [vmem:[#allocation2 + $0x8] sm:$0xff]  ;;  %v3528_v51 = vld [vmem:[#allocation5 + $0x844] ss:$24 sps:$4 sm:$0xff]   ;;  %v3531_v57 = vld [vmem:[#allocation5 + $0x840] ss:$24 sps:$4 sm:$0xff]   ;;  %s4155_s2 = smov [#allocation8]  }
  0x49   :  { %2423 = vmatpush1.bf16.msra.mxu1 %v3482_v18  ;;  %v63_v49 = vld [vmem:[#allocation2 + $0x48] sm:$0xff]  ;;  %v3538_v62 = vld [vmem:[#allocation5 + $0x2a4] ss:$24 sps:$4 sm:$0xff]   ;;  %v3542_v0 = vld [vmem:[#allocation5 + $0x2a0] ss:$24 sps:$4 sm:$0xff]   ;;  %s2989_s25 = sshll.u32 %s4155_s2, 4  ;;  %s2990_s25 = int_to_ptr.vmem [resolvable:$true] %s2989_s25 }
  0x4a   :  { %2509 = vmatpush1.bf16.msra.mxu0 %v3483_v19  ;;  %2424 = vmatprep.subr.bf16.mxu1 %v3484_v20  ;;  %v4215_v52 = vpack.c.bf16 %v63_v49, %v55_v48  ;;  %v59_v53 = vld [vmem:[#allocation2 + $0x28] sm:$0xff]  ;;  %v3540_v63 = vld [vmem:[#allocation5 + $0x8a4] ss:$24 sps:$4 sm:$0xff]   ;;  %v3543_v1 = vld [vmem:[#allocation5 + $0x8a0] ss:$24 sps:$4 sm:$0xff]   ;;  %s4120_s26 = scalar_lea.vmem %s2990_s25, 768  ;;  %p4125_p11 = scmp.lt.s32.totalorder %s2990_s25, %s2990_s25 }
  0x4b   :  { %2510 = vmatprep.subr.bf16.mxu0 %v3486_v21  ;;  %v67_v54 = vld [vmem:[#allocation2 + $0x68] sm:$0xff]  ;;  %v54_v6 = vld [vmem:[#allocation2] sm:$0xff]  ;;  %p4121_p10 = scmp.ne.s32.totalorder %s2990_s25, %s4120_s26  ;;  %p4126_p12 = scmp.lt.s32.totalorder %s4120_s26, %s4120_s26 }
  0x4c   :  { %2446 = vmatprep.mubr.bf16.mxu1 %v4215_v52  ;;  %v4218_v55 = vpack.c.bf16 %v67_v54, %v59_v53  ;;  %v3532_v58 = vld [vmem:[#allocation5 + $0x274] ss:$24 sps:$4 sm:$0xff]   ;;  %v3536_v60 = vld [vmem:[#allocation5 + $0x270] ss:$24 sps:$4 sm:$0xff]   ;;  %v3552_v7 = vld [vmem:[#allocation5 + $0x304] ss:$24 sps:$4 sm:$0xff]  }
  0x4d   :  { %2425 = vmatpush1.bf16.msra.mxu1 %v3488_v22  ;;  %v3534_v59 = vld [vmem:[#allocation5 + $0x874] ss:$24 sps:$4 sm:$0xff]   ;;  %v3537_v61 = vld [vmem:[#allocation5 + $0x870] ss:$24 sps:$4 sm:$0xff]   ;;  %v62_v8 = vld [vmem:[#allocation2 + $0x40] sm:$0xff]  ;;  %p4127_p13 = por %p4126_p12, %p4125_p11 }
  0x4e   :  { %2511 = vmatpush1.bf16.msra.mxu0 %v3489_v23  ;;  %2426 = vmatprep.subr.bf16.mxu1 %v3490_v24  ;;  %v3544_v2 = vld [vmem:[#allocation5 + $0x2d4] ss:$24 sps:$4 sm:$0xff]   ;;  %v3548_v4 = vld [vmem:[#allocation5 + $0x2d0] ss:$24 sps:$4 sm:$0xff]   ;;  %v58_v9 = vld [vmem:[#allocation2 + $0x20] sm:$0xff]  ;;  %v4221_v14 = vpack.c.bf16 %v62_v8, %v54_v6 }
  0x4f   :  { %2512 = vmatprep.subr.bf16.mxu0 %v3492_v25  ;;  %2532 = vmatprep.mubr.bf16.mxu0 %v4218_v55  ;;  %v3546_v3 = vld [vmem:[#allocation5 + $0x8d4] ss:$24 sps:$4 sm:$0xff]   ;;  %v3549_v5 = vld [vmem:[#allocation5 + $0x8d0] ss:$24 sps:$4 sm:$0xff]   ;;  %v66_v10 = vld [vmem:[#allocation2 + $0x60] sm:$0xff]  ;;  %p4128_p0 = pnand %p4127_p13, %p4121_p10 }
  0x50   :  { %v3555_v11 = vld [vmem:[#allocation5 + $0x904] ss:$24 sps:$4 sm:$0xff]   ;;  %v3550_v12 = vld [vmem:[#allocation5 + $0x300] ss:$24 sps:$4 sm:$0xff]   ;;  %v4223_v15 = vpack.c.bf16 %v66_v10, %v58_v9  ;;  %v3558_v16 = vld [vmem:[#allocation5 + $0x334] ss:$24 sps:$4 sm:$0xff]  }
  0x51   :  { %2427 = vmatpush1.bf16.msra.mxu1 %v3494_v26  ;;  %v3553_v13 = vld [vmem:[#allocation5 + $0x900] ss:$24 sps:$4 sm:$0xff]   ;;  %v3561_v17 = vld [vmem:[#allocation5 + $0x934] ss:$24 sps:$4 sm:$0xff]   ;;  %v3556_v18 = vld [vmem:[#allocation5 + $0x330] ss:$24 sps:$4 sm:$0xff]  }
  0x52   :  { %2513 = vmatpush1.bf16.msra.mxu0 %v3495_v27  ;;  %2428 = vmatprep.subr.bf16.mxu1 %v3496_v28  ;;  %v3559_v19 = vld [vmem:[#allocation5 + $0x930] ss:$24 sps:$4 sm:$0xff]   ;;  %v3564_v20 = vld [vmem:[#allocation5 + $0x364] ss:$24 sps:$4 sm:$0xff]   ;;  %v3562_v22 = vld [vmem:[#allocation5 + $0x360] ss:$24 sps:$4 sm:$0xff]  }
  0x53   :  { %2514 = vmatprep.subr.bf16.mxu0 %v3498_v29  ;;  %v3567_v21 = vld [vmem:[#allocation5 + $0x964] ss:$24 sps:$4 sm:$0xff]   ;;  %v3565_v23 = vld [vmem:[#allocation5 + $0x960] ss:$24 sps:$4 sm:$0xff]   ;;  %v3570_v24 = vld [vmem:[#allocation5 + $0x394] ss:$24 sps:$4 sm:$0xff]  }
  0x54   :  { %v3573_v25 = vld [vmem:[#allocation5 + $0x994] ss:$24 sps:$4 sm:$0xff]   ;;  %v3568_v26 = vld [vmem:[#allocation5 + $0x390] ss:$24 sps:$4 sm:$0xff]   ;;  %v3576_v28 = vld [vmem:[#allocation5 + $0x3c4] ss:$24 sps:$4 sm:$0xff]  }
  0x55   :  { %2429 = vmatpush1.bf16.msra.mxu1 %v3500_v30  ;;  %v3571_v27 = vld [vmem:[#allocation5 + $0x990] ss:$24 sps:$4 sm:$0xff]   ;;  %v3579_v29 = vld [vmem:[#allocation5 + $0x9c4] ss:$24 sps:$4 sm:$0xff]   ;;  %v3574_v30 = vld [vmem:[#allocation5 + $0x3c0] ss:$24 sps:$4 sm:$0xff]  }
  0x56   :  { %2515 = vmatpush1.bf16.msra.mxu0 %v3501_v31  ;;  %2430 = vmatprep.subr.bf16.mxu1 %v3502_v32  ;;  %v3577_v31 = vld [vmem:[#allocation5 + $0x9c0] ss:$24 sps:$4 sm:$0xff]   ;;  %v3582_v32 = vld [vmem:[#allocation5 + $0x3f4] ss:$24 sps:$4 sm:$0xff]   ;;  %v3592_v48 = vld [vmem:[#allocation5 + $0x450] ss:$24 sps:$4 sm:$0xff]  }
  0x57   :  { %2516 = vmatprep.subr.bf16.mxu0 %v3504_v33  ;;  %v3585_v33 = vld [vmem:[#allocation5 + $0x9f4] ss:$24 sps:$4 sm:$0xff]   ;;  %v3595_v49 = vld [vmem:[#allocation5 + $0xa50] ss:$24 sps:$4 sm:$0xff]   ;;  %v3598_v53 = vld [vmem:[#allocation5 + $0x480] ss:$24 sps:$4 sm:$0xff]  }
  0x58   :  { %v3601_v54 = vld [vmem:[#allocation5 + $0xa80] ss:$24 sps:$4 sm:$0xff]   ;;  %v3630_v8 = vld [vmem:[#allocation5 + $0x574] ss:$24 sps:$4 sm:$0xff]   ;;  %v3628_v10 = vld [vmem:[#allocation5 + $0x570] ss:$24 sps:$4 sm:$0xff]  }
  0x59   :  { %2431 = vmatpush1.bf16.msra.mxu1 %v3506_v34  ;;  %v3580_v34 = vld [vmem:[#allocation5 + $0x3f0] ss:$24 sps:$4 sm:$0xff]   ;;  %v3622_v6 = vld [vmem:[#allocation5 + $0x540] ss:$24 sps:$4 sm:$0xff]   ;;  %v3633_v9 = vld [vmem:[#allocation5 + $0xb74] ss:$24 sps:$4 sm:$0xff]  }
  0x5a   :  { %2517 = vmatpush1.bf16.msra.mxu0 %v3507_v35  ;;  %2432 = vmatprep.subr.bf16.mxu1 %v3508_v36  ;;  %v3583_v35 = vld [vmem:[#allocation5 + $0x9f0] ss:$24 sps:$4 sm:$0xff]   ;;  %v3588_v36 = vld [vmem:[#allocation5 + $0x424] ss:$24 sps:$4 sm:$0xff]  }
  0x5b   :  { %2518 = vmatprep.subr.bf16.mxu0 %v3510_v37  ;;  %v3591_v37 = vld [vmem:[#allocation5 + $0xa24] ss:$24 sps:$4 sm:$0xff]  }
  0x5d   :  { %2433 = vmatpush1.bf16.msra.mxu1 %v3512_v38  ;;  %v3586_v38 = vld [vmem:[#allocation5 + $0x420] ss:$24 sps:$4 sm:$0xff]  }
  0x5e   :  { %2519 = vmatpush1.bf16.msra.mxu0 %v3513_v39  ;;  %2434 = vmatprep.subr.bf16.mxu1 %v3514_v40  ;;  %v3589_v39 = vld [vmem:[#allocation5 + $0xa20] ss:$24 sps:$4 sm:$0xff]  }
  0x5f   :  { %2520 = vmatprep.subr.bf16.mxu0 %v3516_v41  ;;  %v57_v40 = vld [vmem:[#allocation2 + $0x18] sm:$0xff] }
  0x60   :  { %v65_v41 = vld [vmem:[#allocation2 + $0x58] sm:$0xff] }
  0x61   :  { %2435 = vmatpush1.bf16.msra.mxu1 %v3518_v42  ;;  %v61_v42 = vld [vmem:[#allocation2 + $0x38] sm:$0xff] }
  0x62   :  { %2521 = vmatpush1.bf16.msra.mxu0 %v3519_v43  ;;  %2436 = vmatprep.subr.bf16.mxu1 %v3520_v44  ;;  %v3594_v43 = vld [vmem:[#allocation5 + $0x454] ss:$24 sps:$4 sm:$0xff]  }
  0x63   :  { %2522 = vmatprep.subr.bf16.mxu0 %v3522_v45  ;;  %v3597_v44 = vld [vmem:[#allocation5 + $0xa54] ss:$24 sps:$4 sm:$0xff]   ;;  %v4227_v45 = vpack.c.bf16 %v65_v41, %v57_v40  ;;  %v3669_v41 = vld [vmem:[#allocation5 + $0xa4] ss:$24 sps:$4 sm:$0xff]  }
  0x64   :  { %v3666_v40 = vld [vmem:[#allocation5 + $0x9c] ss:$24 sps:$4 sm:$0xff]  }
  0x65   :  { %2437 = vmatpush1.bf16.msra.mxu1 %v3524_v46  ;;  %v69_v46 = vld [vmem:[#allocation2 + $0x78] sm:$0xff] }
  0x66   :  { %2523 = vmatpush1.bf16.msra.mxu0 %v3525_v47  ;;  %2438 = vmatprep.subr.bf16.mxu1 %v3526_v50  ;;  %v4229_v47 = vpack.c.bf16 %v69_v46, %v61_v42  ;;  %v3600_v50 = vld [vmem:[#allocation5 + $0x484] ss:$24 sps:$4 sm:$0xff]   ;;  %v3664_v42 = vld [vmem:[#allocation5 + $0x98] ss:$24 sps:$4 sm:$0xff]   ;;  %v3675_v46 = vld [vmem:[#allocation5 + $0xd4] ss:$24 sps:$4 sm:$0xff]  }
  0x67   :  { %2524 = vmatprep.subr.bf16.mxu0 %v3528_v51  ;;  %v3603_v51 = vld [vmem:[#allocation5 + $0xa84] ss:$24 sps:$4 sm:$0xff]  }
  0x69   :  { %2439 = vmatpush1.bf16.msra.mxu1 %v3530_v56  ;;  %v3606_v56 = vld [vmem:[#allocation5 + $0x4b4] ss:$24 sps:$4 sm:$0xff]  }
  0x6a   :  { %2525 = vmatpush1.bf16.msra.mxu0 %v3531_v57  ;;  %2440 = vmatprep.subr.bf16.mxu1 %v3532_v58  ;;  %v3609_v57 = vld [vmem:[#allocation5 + $0xab4] ss:$24 sps:$4 sm:$0xff]   ;;  %v3604_v58 = vld [vmem:[#allocation5 + $0x4b0] ss:$24 sps:$4 sm:$0xff]  }
  0x6b   :  { %2526 = vmatprep.subr.bf16.mxu0 %v3534_v59  ;;  %v3607_v59 = vld [vmem:[#allocation5 + $0xab0] ss:$24 sps:$4 sm:$0xff]  }
  0x6d   :  { %2441 = vmatpush1.bf16.msra.mxu1 %v3536_v60  ;;  %v3612_v60 = vld [vmem:[#allocation5 + $0x4e4] ss:$24 sps:$4 sm:$0xff]  }
  0x6e   :  { %2527 = vmatpush1.bf16.msra.mxu0 %v3537_v61  ;;  %2442 = vmatprep.subr.bf16.mxu1 %v3538_v62  ;;  %v3615_v61 = vld [vmem:[#allocation5 + $0xae4] ss:$24 sps:$4 sm:$0xff]   ;;  %v3610_v62 = vld [vmem:[#allocation5 + $0x4e0] ss:$24 sps:$4 sm:$0xff]  }
  0x6f   :  { %2528 = vmatprep.subr.bf16.mxu0 %v3540_v63  ;;  %v3613_v63 = vld [vmem:[#allocation5 + $0xae0] ss:$24 sps:$4 sm:$0xff]  }
  0x71   :  { %2443 = vmatpush1.bf16.msra.mxu1 %v3542_v0  ;;  %v3618_v0 = vld [vmem:[#allocation5 + $0x514] ss:$24 sps:$4 sm:$0xff]  }
  0x72   :  { %2529 = vmatpush1.bf16.msra.mxu0 %v3543_v1  ;;  %2444 = vmatprep.subr.bf16.mxu1 %v3544_v2  ;;  %v3621_v1 = vld [vmem:[#allocation5 + $0xb14] ss:$24 sps:$4 sm:$0xff]   ;;  %v3616_v2 = vld [vmem:[#allocation5 + $0x510] ss:$24 sps:$4 sm:$0xff]  }
  0x73   :  { %2530 = vmatprep.subr.bf16.mxu0 %v3546_v3  ;;  %v3619_v3 = vld [vmem:[#allocation5 + $0xb10] ss:$24 sps:$4 sm:$0xff]  }
  0x75   :  { %2445 = vmatpush1.bf16.msra.mxu1 %v3548_v4  ;;  %v3624_v4 = vld [vmem:[#allocation5 + $0x544] ss:$24 sps:$4 sm:$0xff]  }
  0x76   :  { %2531 = vmatpush1.bf16.msra.mxu0 %v3549_v5  ;;  %2457 = vmatprep.subr.bf16.mxu1 %v3552_v7  ;;  %v3627_v5 = vld [vmem:[#allocation5 + $0xb44] ss:$24 sps:$4 sm:$0xff]   ;;  %v3625_v7 = vld [vmem:[#allocation5 + $0xb40] ss:$24 sps:$4 sm:$0xff]  }
  0x77   :  { %2543 = vmatprep.subr.bf16.mxu0 %v3555_v11  ;;  %v3631_v11 = vld [vmem:[#allocation5 + $0xb70] ss:$24 sps:$4 sm:$0xff]  }
  0x78   :  { %2447 = vmatmul.mubr.bf16.vlgmr.msra.gmra.mrb[0].mxu1 %v4221_v14 }
  0x79   :  { %2533 = vmatmul.mubr.bf16.vlgmr.msra.gmra.mrb[0].mxu0 %v4223_v15  ;;  %2458 = vmatpush1.bf16.msra.mxu1 %v3550_v12  ;;  %v3636_v12 = vld [vmem:[#allocation5 + $0x5a4] ss:$24 sps:$4 sm:$0xff]  }
  0x7a   :  { %2544 = vmatpush1.bf16.msra.mxu0 %v3553_v13  ;;  %2459 = vmatprep.subr.bf16.mxu1 %v3558_v16  ;;  %v3639_v13 = vld [vmem:[#allocation5 + $0xba4] ss:$24 sps:$4 sm:$0xff]   ;;  %v3634_v16 = vld [vmem:[#allocation5 + $0x5a0] ss:$24 sps:$4 sm:$0xff]  }
  0x7b   :  { %2545 = vmatprep.subr.bf16.mxu0 %v3561_v17  ;;  %2489 = vmatprep.mubr.bf16.mxu1 %v4227_v45  ;;  %v3637_v17 = vld [vmem:[#allocation5 + $0xba0] ss:$24 sps:$4 sm:$0xff]  }
  0x7c   :  { %2575 = vmatprep.mubr.bf16.mxu0 %v4229_v47 }
  0x7d   :  { %2460 = vmatpush1.bf16.msra.mxu1 %v3556_v18  ;;  %v3642_v18 = vld [vmem:[#allocation5 + $0x5d4] ss:$24 sps:$4 sm:$0xff]  }
  0x7e   :  { %2546 = vmatpush1.bf16.msra.mxu0 %v3559_v19  ;;  %2461 = vmatprep.subr.bf16.mxu1 %v3564_v20  ;;  %v3645_v19 = vld [vmem:[#allocation5 + $0xbd4] ss:$24 sps:$4 sm:$0xff]   ;;  %v3640_v20 = vld [vmem:[#allocation5 + $0x5d0] ss:$24 sps:$4 sm:$0xff]  }
  0x7f   :  { %2547 = vmatprep.subr.bf16.mxu0 %v3567_v21  ;;  %v3643_v21 = vld [vmem:[#allocation5 + $0xbd0] ss:$24 sps:$4 sm:$0xff]  }
  0x81   :  { %2462 = vmatpush1.bf16.msra.mxu1 %v3562_v22  ;;  %v56_v22 = vld [vmem:[#allocation2 + $0x10] sm:$0xff] }
  0x82   :  { %2548 = vmatpush1.bf16.msra.mxu0 %v3565_v23  ;;  %2463 = vmatprep.subr.bf16.mxu1 %v3570_v24  ;;  %v64_v23 = vld [vmem:[#allocation2 + $0x50] sm:$0xff] }
  0x83   :  { %2549 = vmatprep.subr.bf16.mxu0 %v3573_v25  ;;  %v60_v24 = vld [vmem:[#allocation2 + $0x30] sm:$0xff] }
  0x84   :  { %v68_v25 = vld [vmem:[#allocation2 + $0x70] sm:$0xff] }
  0x85   :  { %2464 = vmatpush1.bf16.msra.mxu1 %v3568_v26  ;;  %v3648_v26 = vld [vmem:[#allocation5 + $0xc] ss:$24 sps:$4 sm:$0xff]  }
  0x86   :  { %2550 = vmatpush1.bf16.msra.mxu0 %v3571_v27  ;;  %2465 = vmatprep.subr.bf16.mxu1 %v3576_v28  ;;  %v3651_v27 = vld [vmem:[#allocation5 + $0x14] ss:$24 sps:$4 sm:$0xff]   ;;  %v4233_v28 = vpack.c.bf16 %v64_v23, %v56_v22  ;;  %v3729_v22 = vld [vmem:[#allocation5 + $0x284] ss:$24 sps:$4 sm:$0xff]   ;;  %v3724_v23 = vld [vmem:[#allocation5 + $0x278] ss:$24 sps:$4 sm:$0xff]  }
  0x87   :  { %2551 = vmatprep.subr.bf16.mxu0 %v3579_v29  ;;  %v4235_v29 = vpack.c.bf16 %v68_v25, %v60_v24  ;;  %v3727_v24 = vld [vmem:[#allocation5 + $0x280] ss:$24 sps:$4 sm:$0xff]   ;;  %v3732_v25 = vld [vmem:[#allocation5 + $0x2ac] ss:$24 sps:$4 sm:$0xff]  }
  0x89   :  { %2466 = vmatpush1.bf16.msra.mxu1 %v3574_v30  ;;  %v3646_v30 = vld [vmem:[#allocation5 + $0x8] ss:$24 sps:$4 sm:$0xff]  }
  0x8a   :  { %2552 = vmatpush1.bf16.msra.mxu0 %v3577_v31  ;;  %2467 = vmatprep.subr.bf16.mxu1 %v3582_v32  ;;  %v3649_v31 = vld [vmem:[#allocation5 + $0x10] ss:$24 sps:$4 sm:$0xff]   ;;  %v3654_v32 = vld [vmem:[#allocation5 + $0x3c] ss:$24 sps:$4 sm:$0xff]  }
  0x8b   :  { %2553 = vmatprep.subr.bf16.mxu0 %v3585_v33  ;;  %v3657_v33 = vld [vmem:[#allocation5 + $0x44] ss:$24 sps:$4 sm:$0xff]  }
  0x8d   :  { %2468 = vmatpush1.bf16.msra.mxu1 %v3580_v34  ;;  %v3652_v34 = vld [vmem:[#allocation5 + $0x38] ss:$24 sps:$4 sm:$0xff]  }
  0x8e   :  { %2554 = vmatpush1.bf16.msra.mxu0 %v3583_v35  ;;  %2469 = vmatprep.subr.bf16.mxu1 %v3588_v36  ;;  %v3655_v35 = vld [vmem:[#allocation5 + $0x40] ss:$24 sps:$4 sm:$0xff]   ;;  %v3660_v36 = vld [vmem:[#allocation5 + $0x6c] ss:$24 sps:$4 sm:$0xff]  }
  0x8f   :  { %2555 = vmatprep.subr.bf16.mxu0 %v3591_v37  ;;  %v3663_v37 = vld [vmem:[#allocation5 + $0x74] ss:$24 sps:$4 sm:$0xff]  }
  0x91   :  { %2470 = vmatpush1.bf16.msra.mxu1 %v3586_v38  ;;  %v3658_v38 = vld [vmem:[#allocation5 + $0x68] ss:$24 sps:$4 sm:$0xff]  }
  0x92   :  { %2556 = vmatpush1.bf16.msra.mxu0 %v3589_v39  ;;  %2471 = vmatprep.subr.bf16.mxu1 %v3594_v43  ;;  %v3661_v39 = vld [vmem:[#allocation5 + $0x70] ss:$24 sps:$4 sm:$0xff]   ;;  %v3667_v43 = vld [vmem:[#allocation5 + $0xa0] ss:$24 sps:$4 sm:$0xff]  }
  0x93   :  { %2557 = vmatprep.subr.bf16.mxu0 %v3597_v44  ;;  %v3672_v44 = vld [vmem:[#allocation5 + $0xcc] ss:$24 sps:$4 sm:$0xff]  }
  0x95   :  { %2472 = vmatpush1.bf16.msra.mxu1 %v3592_v48  ;;  %v3670_v48 = vld [vmem:[#allocation5 + $0xc8] ss:$24 sps:$4 sm:$0xff]  }
  0x96   :  { %2558 = vmatpush1.bf16.msra.mxu0 %v3595_v49  ;;  %2473 = vmatprep.subr.bf16.mxu1 %v3600_v50  ;;  %v3673_v49 = vld [vmem:[#allocation5 + $0xd0] ss:$24 sps:$4 sm:$0xff]   ;;  %v3681_v50 = vld [vmem:[#allocation5 + $0x104] ss:$24 sps:$4 sm:$0xff]  }
  0x97   :  { %2559 = vmatprep.subr.bf16.mxu0 %v3603_v51  ;;  %v3676_v51 = vld [vmem:[#allocation5 + $0xf8] ss:$24 sps:$4 sm:$0xff]  }
  0x99   :  { %2474 = vmatpush1.bf16.msra.mxu1 %v3598_v53  ;;  %v3679_v53 = vld [vmem:[#allocation5 + $0x100] ss:$24 sps:$4 sm:$0xff]  }
  0x9a   :  { %2560 = vmatpush1.bf16.msra.mxu0 %v3601_v54  ;;  %2475 = vmatprep.subr.bf16.mxu1 %v3606_v56  ;;  %v3684_v54 = vld [vmem:[#allocation5 + $0x12c] ss:$24 sps:$4 sm:$0xff]  }
  0x9b   :  { %2561 = vmatprep.subr.bf16.mxu0 %v3609_v57  ;;  %v3687_v56 = vld [vmem:[#allocation5 + $0x134] ss:$24 sps:$4 sm:$0xff]   ;;  %v3682_v57 = vld [vmem:[#allocation5 + $0x128] ss:$24 sps:$4 sm:$0xff]  }
  0x9d   :  { %2476 = vmatpush1.bf16.msra.mxu1 %v3604_v58  ;;  %v3685_v58 = vld [vmem:[#allocation5 + $0x130] ss:$24 sps:$4 sm:$0xff]  }
  0x9e   :  { %2562 = vmatpush1.bf16.msra.mxu0 %v3607_v59  ;;  %2477 = vmatprep.subr.bf16.mxu1 %v3612_v60  ;;  %v3690_v59 = vld [vmem:[#allocation5 + $0x15c] ss:$24 sps:$4 sm:$0xff]  }
  0x9f   :  { %2563 = vmatprep.subr.bf16.mxu0 %v3615_v61  ;;  %v3693_v60 = vld [vmem:[#allocation5 + $0x164] ss:$24 sps:$4 sm:$0xff]   ;;  %v3688_v61 = vld [vmem:[#allocation5 + $0x158] ss:$24 sps:$4 sm:$0xff]  }
  0xa1   :  { %2478 = vmatpush1.bf16.msra.mxu1 %v3610_v62  ;;  %v3691_v62 = vld [vmem:[#allocation5 + $0x160] ss:$24 sps:$4 sm:$0xff]  }
  0xa2   :  { %2564 = vmatpush1.bf16.msra.mxu0 %v3613_v63  ;;  %2479 = vmatprep.subr.bf16.mxu1 %v3618_v0  ;;  %v3696_v63 = vld [vmem:[#allocation5 + $0x18c] ss:$24 sps:$4 sm:$0xff]  }
  0xa3   :  { %2565 = vmatprep.subr.bf16.mxu0 %v3621_v1  ;;  %v3699_v0 = vld [vmem:[#allocation5 + $0x194] ss:$24 sps:$4 sm:$0xff]   ;;  %v3694_v1 = vld [vmem:[#allocation5 + $0x188] ss:$24 sps:$4 sm:$0xff]  }
  0xa5   :  { %2480 = vmatpush1.bf16.msra.mxu1 %v3616_v2  ;;  %v3697_v2 = vld [vmem:[#allocation5 + $0x190] ss:$24 sps:$4 sm:$0xff]  }
  0xa6   :  { %2566 = vmatpush1.bf16.msra.mxu0 %v3619_v3  ;;  %2481 = vmatprep.subr.bf16.mxu1 %v3624_v4  ;;  %v3702_v3 = vld [vmem:[#allocation5 + $0x1bc] ss:$24 sps:$4 sm:$0xff]  }
  0xa7   :  { %2567 = vmatprep.subr.bf16.mxu0 %v3627_v5  ;;  %v3705_v4 = vld [vmem:[#allocation5 + $0x1c4] ss:$24 sps:$4 sm:$0xff]   ;;  %v3700_v5 = vld [vmem:[#allocation5 + $0x1b8] ss:$24 sps:$4 sm:$0xff]  }
  0xa9   :  { %2482 = vmatpush1.bf16.msra.mxu1 %v3622_v6  ;;  %v3703_v6 = vld [vmem:[#allocation5 + $0x1c0] ss:$24 sps:$4 sm:$0xff]  }
  0xaa   :  { %2568 = vmatpush1.bf16.msra.mxu0 %v3625_v7  ;;  %2483 = vmatprep.subr.bf16.mxu1 %v3630_v8  ;;  %v3708_v7 = vld [vmem:[#allocation5 + $0x1ec] ss:$24 sps:$4 sm:$0xff]  }
  0xab   :  { %2569 = vmatprep.subr.bf16.mxu0 %v3633_v9  ;;  %v3711_v8 = vld [vmem:[#allocation5 + $0x1f4] ss:$24 sps:$4 sm:$0xff]   ;;  %v3706_v9 = vld [vmem:[#allocation5 + $0x1e8] ss:$24 sps:$4 sm:$0xff]  }
  0xad   :  { %2484 = vmatpush1.bf16.msra.mxu1 %v3628_v10  ;;  %v3709_v10 = vld [vmem:[#allocation5 + $0x1f0] ss:$24 sps:$4 sm:$0xff]  }
  0xae   :  { %2570 = vmatpush1.bf16.msra.mxu0 %v3631_v11  ;;  %2485 = vmatprep.subr.bf16.mxu1 %v3636_v12  ;;  %v3714_v11 = vld [vmem:[#allocation5 + $0x21c] ss:$24 sps:$4 sm:$0xff]  }
  0xaf   :  { %2571 = vmatprep.subr.bf16.mxu0 %v3639_v13  ;;  %v3717_v12 = vld [vmem:[#allocation5 + $0x224] ss:$24 sps:$4 sm:$0xff]   ;;  %v3712_v13 = vld [vmem:[#allocation5 + $0x218] ss:$24 sps:$4 sm:$0xff]  }
  0xb1   :  { %2486 = vmatpush1.bf16.msra.mxu1 %v3634_v16  ;;  %v3715_v16 = vld [vmem:[#allocation5 + $0x220] ss:$24 sps:$4 sm:$0xff]  }
  0xb2   :  { %2572 = vmatpush1.bf16.msra.mxu0 %v3637_v17  ;;  %2487 = vmatprep.subr.bf16.mxu1 %v3642_v18  ;;  %v3720_v17 = vld [vmem:[#allocation5 + $0x24c] ss:$24 sps:$4 sm:$0xff]  }
  0xb3   :  { %2573 = vmatprep.subr.bf16.mxu0 %v3645_v19  ;;  %v3723_v18 = vld [vmem:[#allocation5 + $0x254] ss:$24 sps:$4 sm:$0xff]   ;;  %v3718_v19 = vld [vmem:[#allocation5 + $0x248] ss:$24 sps:$4 sm:$0xff]  }
  0xb5   :  { %2488 = vmatpush1.bf16.msra.mxu1 %v3640_v20  ;;  %v3721_v20 = vld [vmem:[#allocation5 + $0x250] ss:$24 sps:$4 sm:$0xff]  }
  0xb6   :  { %2574 = vmatpush1.bf16.msra.mxu0 %v3643_v21  ;;  %2586 = vmatprep.subr.bf16.mxu1 %v3648_v26  ;;  %v3726_v21 = vld [vmem:[#allocation5 + $0x27c] ss:$24 sps:$4 sm:$0xff]  }
  0xb7   :  { %2758 = vmatprep.subr.bf16.mxu0 %v3651_v27  ;;  %v3735_v26 = vld [vmem:[#allocation5 + $0x2b4] ss:$24 sps:$4 sm:$0xff]   ;;  %v3730_v27 = vld [vmem:[#allocation5 + $0x2a8] ss:$24 sps:$4 sm:$0xff]  }
  0xb8   :  { %2490 = vmatmul.mubr.bf16.vlgmr.msra.gmra.mrb[0].mxu1 %v4233_v28 }
  0xb9   :  { %2576 = vmatmul.mubr.bf16.vlgmr.msra.gmra.mrb[0].mxu0 %v4235_v29  ;;  %2587 = vmatpush1.bf16.msra.mxu1 %v3646_v30  ;;  %v3733_v30 = vld [vmem:[#allocation5 + $0x2b0] ss:$24 sps:$4 sm:$0xff]  }
  0xba   :  { %2759 = vmatpush1.bf16.msra.mxu0 %v3649_v31  ;;  %2588 = vmatprep.subr.bf16.mxu1 %v3654_v32  ;;  %v3738_v31 = vld [vmem:[#allocation5 + $0x2dc] ss:$24 sps:$4 sm:$0xff]  }
  0xbb   :  { %2760 = vmatprep.subr.bf16.mxu0 %v3657_v33  ;;  %2618 = vmatprep.mubr.bf16.mxu1 %v4215_v52  ;;  %v3741_v32 = vld [vmem:[#allocation5 + $0x2e4] ss:$24 sps:$4 sm:$0xff]   ;;  %v3736_v33 = vld [vmem:[#allocation5 + $0x2d8] ss:$24 sps:$4 sm:$0xff]  }
  0xbc   :  { %2790 = vmatprep.mubr.bf16.mxu0 %v4215_v52  ;;  %v3678_v52 = vld [vmem:[#allocation5 + $0xfc] ss:$24 sps:$4 sm:$0xff]  }
  0xbd   :  { %2589 = vmatpush1.bf16.msra.mxu1 %v3652_v34  ;;  %v3739_v34 = vld [vmem:[#allocation5 + $0x2e0] ss:$24 sps:$4 sm:$0xff]  }
  0xbe   :  { %2761 = vmatpush1.bf16.msra.mxu0 %v3655_v35  ;;  %2590 = vmatprep.subr.bf16.mxu1 %v3660_v36  ;;  %v3744_v35 = vld [vmem:[#allocation5 + $0x30c] ss:$24 sps:$4 sm:$0xff]  }
  0xbf   :  { %2762 = vmatprep.subr.bf16.mxu0 %v3663_v37  ;;  %v3747_v36 = vld [vmem:[#allocation5 + $0x314] ss:$24 sps:$4 sm:$0xff]   ;;  %v3742_v37 = vld [vmem:[#allocation5 + $0x308] ss:$24 sps:$4 sm:$0xff]  }
  0xc1   :  { %2591 = vmatpush1.bf16.msra.mxu1 %v3658_v38  ;;  %v3745_v38 = vld [vmem:[#allocation5 + $0x310] ss:$24 sps:$4 sm:$0xff]  }
  0xc2   :  { %2763 = vmatpush1.bf16.msra.mxu0 %v3661_v39  ;;  %2592 = vmatprep.subr.bf16.mxu1 %v3666_v40  ;;  %v3750_v39 = vld [vmem:[#allocation5 + $0x33c] ss:$24 sps:$4 sm:$0xff]  }
  0xc3   :  { %2764 = vmatprep.subr.bf16.mxu0 %v3669_v41  ;;  %v3753_v40 = vld [vmem:[#allocation5 + $0x344] ss:$24 sps:$4 sm:$0xff]   ;;  %v3748_v41 = vld [vmem:[#allocation5 + $0x338] ss:$24 sps:$4 sm:$0xff]  }
  0xc5   :  { %2593 = vmatpush1.bf16.msra.mxu1 %v3664_v42  ;;  %v3751_v42 = vld [vmem:[#allocation5 + $0x340] ss:$24 sps:$4 sm:$0xff]  }
  0xc6   :  { %2765 = vmatpush1.bf16.msra.mxu0 %v3667_v43  ;;  %2594 = vmatprep.subr.bf16.mxu1 %v3672_v44  ;;  %v3756_v43 = vld [vmem:[#allocation5 + $0x36c] ss:$24 sps:$4 sm:$0xff]  }
  0xc7   :  { %2766 = vmatprep.subr.bf16.mxu0 %v3675_v46  ;;  %v3759_v44 = vld [vmem:[#allocation5 + $0x374] ss:$24 sps:$4 sm:$0xff]   ;;  %v3754_v46 = vld [vmem:[#allocation5 + $0x368] ss:$24 sps:$4 sm:$0xff]  }
  0xc9   :  { %2595 = vmatpush1.bf16.msra.mxu1 %v3670_v48  ;;  %v3757_v48 = vld [vmem:[#allocation5 + $0x370] ss:$24 sps:$4 sm:$0xff]  }
  0xca   :  { %2767 = vmatpush1.bf16.msra.mxu0 %v3673_v49  ;;  %2596 = vmatprep.subr.bf16.mxu1 %v3678_v52  ;;  %v3762_v49 = vld [vmem:[#allocation5 + $0x39c] ss:$24 sps:$4 sm:$0xff]   ;;  %v3760_v52 = vld [vmem:[#allocation5 + $0x398] ss:$24 sps:$4 sm:$0xff]  }
  0xcb   :  { %2768 = vmatprep.subr.bf16.mxu0 %v3681_v50  ;;  %v3763_v50 = vld [vmem:[#allocation5 + $0x3a0] ss:$24 sps:$4 sm:$0xff]  }
  0xcd   :  { %2597 = vmatpush1.bf16.msra.mxu1 %v3676_v51  ;;  %v3768_v51 = vld [vmem:[#allocation5 + $0x3cc] ss:$24 sps:$4 sm:$0xff]  }
  0xce   :  { %2769 = vmatpush1.bf16.msra.mxu0 %v3679_v53  ;;  %2598 = vmatprep.subr.bf16.mxu1 %v3684_v54  ;;  %v3771_v53 = vld [vmem:[#allocation5 + $0x3d4] ss:$24 sps:$4 sm:$0xff]   ;;  %v3766_v54 = vld [vmem:[#allocation5 + $0x3c8] ss:$24 sps:$4 sm:$0xff]  }
  0xcf   :  { %2770 = vmatprep.subr.bf16.mxu0 %v3687_v56  ;;  %v3769_v56 = vld [vmem:[#allocation5 + $0x3d0] ss:$24 sps:$4 sm:$0xff]  }
  0xd1   :  { %2599 = vmatpush1.bf16.msra.mxu1 %v3682_v57  ;;  %v3777_v57 = vld [vmem:[#allocation5 + $0x404] ss:$24 sps:$4 sm:$0xff]  }
  0xd2   :  { %2771 = vmatpush1.bf16.msra.mxu0 %v3685_v58  ;;  %2600 = vmatprep.subr.bf16.mxu1 %v3690_v59  ;;  %v3772_v58 = vld [vmem:[#allocation5 + $0x3f8] ss:$24 sps:$4 sm:$0xff]  }
  0xd3   :  { %2772 = vmatprep.subr.bf16.mxu0 %v3693_v60  ;;  %v3775_v59 = vld [vmem:[#allocation5 + $0x400] ss:$24 sps:$4 sm:$0xff]   ;;  %v3780_v60 = vld [vmem:[#allocation5 + $0x42c] ss:$24 sps:$4 sm:$0xff]  }
  0xd5   :  { %2601 = vmatpush1.bf16.msra.mxu1 %v3688_v61  ;;  %v3783_v61 = vld [vmem:[#allocation5 + $0x434] ss:$24 sps:$4 sm:$0xff]  }
  0xd6   :  { %2773 = vmatpush1.bf16.msra.mxu0 %v3691_v62  ;;  %2602 = vmatprep.subr.bf16.mxu1 %v3696_v63  ;;  %v3778_v62 = vld [vmem:[#allocation5 + $0x428] ss:$24 sps:$4 sm:$0xff]  }
  0xd7   :  { %2774 = vmatprep.subr.bf16.mxu0 %v3699_v0  ;;  %v3781_v63 = vld [vmem:[#allocation5 + $0x430] ss:$24 sps:$4 sm:$0xff]   ;;  %v3786_v0 = vld [vmem:[#allocation5 + $0x45c] ss:$24 sps:$4 sm:$0xff]  }
  0xd9   :  { %2603 = vmatpush1.bf16.msra.mxu1 %v3694_v1  ;;  %v3789_v1 = vld [vmem:[#allocation5 + $0x464] ss:$24 sps:$4 sm:$0xff]  }
  0xda   :  { %2775 = vmatpush1.bf16.msra.mxu0 %v3697_v2  ;;  %2604 = vmatprep.subr.bf16.mxu1 %v3702_v3  ;;  %v3784_v2 = vld [vmem:[#allocation5 + $0x458] ss:$24 sps:$4 sm:$0xff]  }
  0xdb   :  { %2776 = vmatprep.subr.bf16.mxu0 %v3705_v4  ;;  %v3787_v3 = vld [vmem:[#allocation5 + $0x460] ss:$24 sps:$4 sm:$0xff]   ;;  %v3792_v4 = vld [vmem:[#allocation5 + $0x48c] ss:$24 sps:$4 sm:$0xff]  }
  0xdd   :  { %2605 = vmatpush1.bf16.msra.mxu1 %v3700_v5  ;;  %v3795_v5 = vld [vmem:[#allocation5 + $0x494] ss:$24 sps:$4 sm:$0xff]  }
  0xde   :  { %2777 = vmatpush1.bf16.msra.mxu0 %v3703_v6  ;;  %2606 = vmatprep.subr.bf16.mxu1 %v3708_v7  ;;  %v3790_v6 = vld [vmem:[#allocation5 + $0x488] ss:$24 sps:$4 sm:$0xff]  }
  0xdf   :  { %2778 = vmatprep.subr.bf16.mxu0 %v3711_v8  ;;  %v3793_v7 = vld [vmem:[#allocation5 + $0x490] ss:$24 sps:$4 sm:$0xff]   ;;  %v3798_v8 = vld [vmem:[#allocation5 + $0x4bc] ss:$24 sps:$4 sm:$0xff]  }
  0xe1   :  { %2607 = vmatpush1.bf16.msra.mxu1 %v3706_v9  ;;  %v3801_v9 = vld [vmem:[#allocation5 + $0x4c4] ss:$24 sps:$4 sm:$0xff]  }
  0xe2   :  { %2779 = vmatpush1.bf16.msra.mxu0 %v3709_v10  ;;  %2608 = vmatprep.subr.bf16.mxu1 %v3714_v11  ;;  %v3796_v10 = vld [vmem:[#allocation5 + $0x4b8] ss:$24 sps:$4 sm:$0xff]  }
  0xe3   :  { %2780 = vmatprep.subr.bf16.mxu0 %v3717_v12  ;;  %v3799_v11 = vld [vmem:[#allocation5 + $0x4c0] ss:$24 sps:$4 sm:$0xff]   ;;  %v3804_v12 = vld [vmem:[#allocation5 + $0x4ec] ss:$24 sps:$4 sm:$0xff]  }
  0xe5   :  { %2609 = vmatpush1.bf16.msra.mxu1 %v3712_v13  ;;  %v3807_v13 = vld [vmem:[#allocation5 + $0x4f4] ss:$24 sps:$4 sm:$0xff]  }
  0xe6   :  { %2781 = vmatpush1.bf16.msra.mxu0 %v3715_v16  ;;  %2610 = vmatprep.subr.bf16.mxu1 %v3720_v17  ;;  %v3802_v16 = vld [vmem:[#allocation5 + $0x4e8] ss:$24 sps:$4 sm:$0xff]  }
  0xe7   :  { %2782 = vmatprep.subr.bf16.mxu0 %v3723_v18  ;;  %v3805_v17 = vld [vmem:[#allocation5 + $0x4f0] ss:$24 sps:$4 sm:$0xff]   ;;  %v3810_v18 = vld [vmem:[#allocation5 + $0x51c] ss:$24 sps:$4 sm:$0xff]  }
  0xe9   :  { %2611 = vmatpush1.bf16.msra.mxu1 %v3718_v19  ;;  %v3813_v19 = vld [vmem:[#allocation5 + $0x524] ss:$24 sps:$4 sm:$0xff]  }
  0xea   :  { %2783 = vmatpush1.bf16.msra.mxu0 %v3721_v20  ;;  %2612 = vmatprep.subr.bf16.mxu1 %v3726_v21  ;;  %v3808_v20 = vld [vmem:[#allocation5 + $0x518] ss:$24 sps:$4 sm:$0xff]  }
  0xeb   :  { %2784 = vmatprep.subr.bf16.mxu0 %v3729_v22  ;;  %v3811_v21 = vld [vmem:[#allocation5 + $0x520] ss:$24 sps:$4 sm:$0xff]   ;;  %v3816_v22 = vld [vmem:[#allocation5 + $0x54c] ss:$24 sps:$4 sm:$0xff]  }
  0xed   :  { %2613 = vmatpush1.bf16.msra.mxu1 %v3724_v23  ;;  %v3819_v23 = vld [vmem:[#allocation5 + $0x554] ss:$24 sps:$4 sm:$0xff]  }
  0xee   :  { %2785 = vmatpush1.bf16.msra.mxu0 %v3727_v24  ;;  %2614 = vmatprep.subr.bf16.mxu1 %v3732_v25  ;;  %v3814_v24 = vld [vmem:[#allocation5 + $0x548] ss:$24 sps:$4 sm:$0xff]  }
  0xef   :  { %2786 = vmatprep.subr.bf16.mxu0 %v3735_v26  ;;  %v3817_v25 = vld [vmem:[#allocation5 + $0x550] ss:$24 sps:$4 sm:$0xff]   ;;  %v3822_v26 = vld [vmem:[#allocation5 + $0x57c] ss:$24 sps:$4 sm:$0xff]  }
  0xf1   :  { %2615 = vmatpush1.bf16.msra.mxu1 %v3730_v27  ;;  %v3825_v27 = vld [vmem:[#allocation5 + $0x584] ss:$24 sps:$4 sm:$0xff]  }
  0xf2   :  { %2787 = vmatpush1.bf16.msra.mxu0 %v3733_v30  ;;  %2616 = vmatprep.subr.bf16.mxu1 %v3738_v31  ;;  %v3820_v30 = vld [vmem:[#allocation5 + $0x578] ss:$24 sps:$4 sm:$0xff]  }
  0xf3   :  { %2788 = vmatprep.subr.bf16.mxu0 %v3741_v32  ;;  %v3823_v31 = vld [vmem:[#allocation5 + $0x580] ss:$24 sps:$4 sm:$0xff]   ;;  %v3828_v32 = vld [vmem:[#allocation5 + $0x5ac] ss:$24 sps:$4 sm:$0xff]  }
  0xf5   :  { %2617 = vmatpush1.bf16.msra.mxu1 %v3736_v33  ;;  %v3831_v33 = vld [vmem:[#allocation5 + $0x5b4] ss:$24 sps:$4 sm:$0xff]  }
  0xf6   :  { %2789 = vmatpush1.bf16.msra.mxu0 %v3739_v34  ;;  %2629 = vmatprep.subr.bf16.mxu1 %v3744_v35  ;;  %v3826_v34 = vld [vmem:[#allocation5 + $0x5a8] ss:$24 sps:$4 sm:$0xff]  }
  0xf7   :  { %2801 = vmatprep.subr.bf16.mxu0 %v3747_v36  ;;  %v3829_v35 = vld [vmem:[#allocation5 + $0x5b0] ss:$24 sps:$4 sm:$0xff]   ;;  %v3834_v36 = vld [vmem:[#allocation5 + $0x5dc] ss:$24 sps:$4 sm:$0xff]  }
  0xf8   :  { %2619 = vmatmul.mubr.bf16.vlgmr.msra.gmra.mrb[4].mxu1 %v4221_v14 }
  0xf9   :  { %2791 = vmatmul.mubr.bf16.vlgmr.msra.gmra.mrb[4].mxu0 %v4221_v14  ;;  %2630 = vmatpush1.bf16.msra.mxu1 %v3742_v37  ;;  %v3765_v14 = vld [vmem:[#allocation5 + $0x3a4] ss:$24 sps:$4 sm:$0xff]  }
  0xfa   :  { %2802 = vmatpush1.bf16.msra.mxu0 %v3745_v38  ;;  %2631 = vmatprep.subr.bf16.mxu1 %v3750_v39  ;;  %v3837_v37 = vld [vmem:[#allocation5 + $0x5e4] ss:$24 sps:$4 sm:$0xff]   ;;  %v3832_v38 = vld [vmem:[#allocation5 + $0x5d8] ss:$24 sps:$4 sm:$0xff]  }
  0xfb   :  { %2803 = vmatprep.subr.bf16.mxu0 %v3753_v40  ;;  %2661 = vmatprep.mubr.bf16.mxu1 %v4227_v45  ;;  %v3835_v39 = vld [vmem:[#allocation5 + $0x5e0] ss:$24 sps:$4 sm:$0xff]   ;;  %v3840_v40 = vld [vmem:[#allocation5 + $0x60c] ss:$24 sps:$4 sm:$0xff]  }
  0xfc   :  { %2833 = vmatprep.mubr.bf16.mxu0 %v4227_v45  ;;  %v3774_v45 = vld [vmem:[#allocation5 + $0x3fc] ss:$24 sps:$4 sm:$0xff]  }
  0xfd   :  { %2632 = vmatpush1.bf16.msra.mxu1 %v3748_v41  ;;  %v3843_v41 = vld [vmem:[#allocation5 + $0x614] ss:$24 sps:$4 sm:$0xff]  }
  0xfe   :  { %2804 = vmatpush1.bf16.msra.mxu0 %v3751_v42  ;;  %2633 = vmatprep.subr.bf16.mxu1 %v3756_v43  ;;  %v3838_v42 = vld [vmem:[#allocation5 + $0x608] ss:$24 sps:$4 sm:$0xff]  }
  0xff   :  { %2805 = vmatprep.subr.bf16.mxu0 %v3759_v44  ;;  %v3841_v43 = vld [vmem:[#allocation5 + $0x610] ss:$24 sps:$4 sm:$0xff]   ;;  %v3846_v44 = vld [vmem:[#allocation5 + $0x63c] ss:$24 sps:$4 sm:$0xff]  }
 0x101   :  { %2634 = vmatpush1.bf16.msra.mxu1 %v3754_v46  ;;  %v3849_v46 = vld [vmem:[#allocation5 + $0x644] ss:$24 sps:$4 sm:$0xff]  }
 0x102   :  { %2806 = vmatpush1.bf16.msra.mxu0 %v3757_v48  ;;  %2635 = vmatprep.subr.bf16.mxu1 %v3762_v49  ;;  %v3844_v48 = vld [vmem:[#allocation5 + $0x638] ss:$24 sps:$4 sm:$0xff]  }
 0x103   :  { %2807 = vmatprep.subr.bf16.mxu0 %v3765_v14  ;;  %v3847_v49 = vld [vmem:[#allocation5 + $0x640] ss:$24 sps:$4 sm:$0xff]   ;;  %v3852_v14 = vld [vmem:[#allocation5 + $0x66c] ss:$24 sps:$4 sm:$0xff]  }
 0x105   :  { %2636 = vmatpush1.bf16.msra.mxu1 %v3760_v52  ;;  %v3855_v52 = vld [vmem:[#allocation5 + $0x674] ss:$24 sps:$4 sm:$0xff]  }
 0x106   :  { %2808 = vmatpush1.bf16.msra.mxu0 %v3763_v50  ;;  %2637 = vmatprep.subr.bf16.mxu1 %v3768_v51  ;;  %v3850_v50 = vld [vmem:[#allocation5 + $0x668] ss:$24 sps:$4 sm:$0xff]  }
 0x107   :  { %2809 = vmatprep.subr.bf16.mxu0 %v3771_v53  ;;  %v3853_v51 = vld [vmem:[#allocation5 + $0x670] ss:$24 sps:$4 sm:$0xff]   ;;  %v3858_v53 = vld [vmem:[#allocation5 + $0x69c] ss:$24 sps:$4 sm:$0xff]  }
 0x109   :  { %2638 = vmatpush1.bf16.msra.mxu1 %v3766_v54  ;;  %v3856_v54 = vld [vmem:[#allocation5 + $0x698] ss:$24 sps:$4 sm:$0xff]  }
 0x10a   :  { %2810 = vmatpush1.bf16.msra.mxu0 %v3769_v56  ;;  %2639 = vmatprep.subr.bf16.mxu1 %v3774_v45  ;;  %v3859_v56 = vld [vmem:[#allocation5 + $0x6a0] ss:$24 sps:$4 sm:$0xff]   ;;  %v3864_v45 = vld [vmem:[#allocation5 + $0x6cc] ss:$24 sps:$4 sm:$0xff]  }
 0x10b   :  { %2811 = vmatprep.subr.bf16.mxu0 %v3777_v57  ;;  %v3867_v57 = vld [vmem:[#allocation5 + $0x6d4] ss:$24 sps:$4 sm:$0xff]  }
 0x10d   :  { %2640 = vmatpush1.bf16.msra.mxu1 %v3772_v58  ;;  %v3862_v58 = vld [vmem:[#allocation5 + $0x6c8] ss:$24 sps:$4 sm:$0xff]  }
 0x10e   :  { %2812 = vmatpush1.bf16.msra.mxu0 %v3775_v59  ;;  %2641 = vmatprep.subr.bf16.mxu1 %v3780_v60  ;;  %v3870_v59 = vld [vmem:[#allocation5 + $0x6fc] ss:$24 sps:$4 sm:$0xff]  }
 0x10f   :  { %2813 = vmatprep.subr.bf16.mxu0 %v3783_v61  ;;  %v3873_v60 = vld [vmem:[#allocation5 + $0x704] ss:$24 sps:$4 sm:$0xff]   ;;  %v3868_v61 = vld [vmem:[#allocation5 + $0x6f8] ss:$24 sps:$4 sm:$0xff]  }
 0x111   :  { %2642 = vmatpush1.bf16.msra.mxu1 %v3778_v62  ;;  %v3871_v62 = vld [vmem:[#allocation5 + $0x700] ss:$24 sps:$4 sm:$0xff]  }
 0x112   :  { %2814 = vmatpush1.bf16.msra.mxu0 %v3781_v63  ;;  %2643 = vmatprep.subr.bf16.mxu1 %v3786_v0  ;;  %v3876_v63 = vld [vmem:[#allocation5 + $0x72c] ss:$24 sps:$4 sm:$0xff]  }
 0x113   :  { %2815 = vmatprep.subr.bf16.mxu0 %v3789_v1  ;;  %v3879_v0 = vld [vmem:[#allocation5 + $0x734] ss:$24 sps:$4 sm:$0xff]   ;;  %v3874_v1 = vld [vmem:[#allocation5 + $0x728] ss:$24 sps:$4 sm:$0xff]  }
 0x115   :  { %2644 = vmatpush1.bf16.msra.mxu1 %v3784_v2  ;;  %v3877_v2 = vld [vmem:[#allocation5 + $0x730] ss:$24 sps:$4 sm:$0xff]  }
 0x116   :  { %2816 = vmatpush1.bf16.msra.mxu0 %v3787_v3  ;;  %2645 = vmatprep.subr.bf16.mxu1 %v3792_v4  ;;  %v3882_v3 = vld [vmem:[#allocation5 + $0x75c] ss:$24 sps:$4 sm:$0xff]  }
 0x117   :  { %2817 = vmatprep.subr.bf16.mxu0 %v3795_v5  ;;  %v3885_v4 = vld [vmem:[#allocation5 + $0x764] ss:$24 sps:$4 sm:$0xff]   ;;  %v3880_v5 = vld [vmem:[#allocation5 + $0x758] ss:$24 sps:$4 sm:$0xff]  }
 0x119   :  { %2646 = vmatpush1.bf16.msra.mxu1 %v3790_v6  ;;  %v3883_v6 = vld [vmem:[#allocation5 + $0x760] ss:$24 sps:$4 sm:$0xff]  }
 0x11a   :  { %2818 = vmatpush1.bf16.msra.mxu0 %v3793_v7  ;;  %2647 = vmatprep.subr.bf16.mxu1 %v3798_v8  ;;  %v3888_v7 = vld [vmem:[#allocation5 + $0x78c] ss:$24 sps:$4 sm:$0xff]  }
 0x11b   :  { %2819 = vmatprep.subr.bf16.mxu0 %v3801_v9  ;;  %v3891_v8 = vld [vmem:[#allocation5 + $0x794] ss:$24 sps:$4 sm:$0xff]   ;;  %v3886_v9 = vld [vmem:[#allocation5 + $0x788] ss:$24 sps:$4 sm:$0xff]  }
 0x11d   :  { %2648 = vmatpush1.bf16.msra.mxu1 %v3796_v10  ;;  %v3889_v10 = vld [vmem:[#allocation5 + $0x790] ss:$24 sps:$4 sm:$0xff]  }
 0x11e   :  { %2820 = vmatpush1.bf16.msra.mxu0 %v3799_v11  ;;  %2649 = vmatprep.subr.bf16.mxu1 %v3804_v12  ;;  %v3894_v11 = vld [vmem:[#allocation5 + $0x7bc] ss:$24 sps:$4 sm:$0xff]  }
 0x11f   :  { %2821 = vmatprep.subr.bf16.mxu0 %v3807_v13  ;;  %v3897_v12 = vld [vmem:[#allocation5 + $0x7c4] ss:$24 sps:$4 sm:$0xff]   ;;  %v3892_v13 = vld [vmem:[#allocation5 + $0x7b8] ss:$24 sps:$4 sm:$0xff]  }
 0x121   :  { %2650 = vmatpush1.bf16.msra.mxu1 %v3802_v16  ;;  %v3895_v16 = vld [vmem:[#allocation5 + $0x7c0] ss:$24 sps:$4 sm:$0xff]  }
 0x122   :  { %2822 = vmatpush1.bf16.msra.mxu0 %v3805_v17  ;;  %2651 = vmatprep.subr.bf16.mxu1 %v3810_v18  ;;  %v3900_v17 = vld [vmem:[#allocation5 + $0x7ec] ss:$24 sps:$4 sm:$0xff]  }
 0x123   :  { %2823 = vmatprep.subr.bf16.mxu0 %v3813_v19  ;;  %v3903_v18 = vld [vmem:[#allocation5 + $0x7f4] ss:$24 sps:$4 sm:$0xff]   ;;  %v3898_v19 = vld [vmem:[#allocation5 + $0x7e8] ss:$24 sps:$4 sm:$0xff]  }
 0x125   :  { %2652 = vmatpush1.bf16.msra.mxu1 %v3808_v20  ;;  %v3901_v20 = vld [vmem:[#allocation5 + $0x7f0] ss:$24 sps:$4 sm:$0xff]  }
 0x126   :  { %2824 = vmatpush1.bf16.msra.mxu0 %v3811_v21  ;;  %2653 = vmatprep.subr.bf16.mxu1 %v3816_v22  ;;  %v3906_v21 = vld [vmem:[#allocation5 + $0x81c] ss:$24 sps:$4 sm:$0xff]  }
 0x127   :  { %2825 = vmatprep.subr.bf16.mxu0 %v3819_v23  ;;  %v3909_v22 = vld [vmem:[#allocation5 + $0x824] ss:$24 sps:$4 sm:$0xff]   ;;  %v3904_v23 = vld [vmem:[#allocation5 + $0x818] ss:$24 sps:$4 sm:$0xff]  }
 0x129   :  { %2654 = vmatpush1.bf16.msra.mxu1 %v3814_v24  ;;  %v3907_v24 = vld [vmem:[#allocation5 + $0x820] ss:$24 sps:$4 sm:$0xff]  }
 0x12a   :  { %2826 = vmatpush1.bf16.msra.mxu0 %v3817_v25  ;;  %2655 = vmatprep.subr.bf16.mxu1 %v3822_v26  ;;  %v3912_v25 = vld [vmem:[#allocation5 + $0x84c] ss:$24 sps:$4 sm:$0xff]  }
 0x12b   :  { %2827 = vmatprep.subr.bf16.mxu0 %v3825_v27  ;;  %v3915_v26 = vld [vmem:[#allocation5 + $0x854] ss:$24 sps:$4 sm:$0xff]   ;;  %v3910_v27 = vld [vmem:[#allocation5 + $0x848] ss:$24 sps:$4 sm:$0xff]  }
 0x12d   :  { %2656 = vmatpush1.bf16.msra.mxu1 %v3820_v30  ;;  %v3913_v30 = vld [vmem:[#allocation5 + $0x850] ss:$24 sps:$4 sm:$0xff]  }
 0x12e   :  { %2828 = vmatpush1.bf16.msra.mxu0 %v3823_v31  ;;  %2657 = vmatprep.subr.bf16.mxu1 %v3828_v32  ;;  %v3918_v31 = vld [vmem:[#allocation5 + $0x87c] ss:$24 sps:$4 sm:$0xff]  }
 0x12f   :  { %2829 = vmatprep.subr.bf16.mxu0 %v3831_v33  ;;  %v3921_v32 = vld [vmem:[#allocation5 + $0x884] ss:$24 sps:$4 sm:$0xff]   ;;  %v3916_v33 = vld [vmem:[#allocation5 + $0x878] ss:$24 sps:$4 sm:$0xff]  }
 0x131   :  { %2658 = vmatpush1.bf16.msra.mxu1 %v3826_v34  ;;  %v3919_v34 = vld [vmem:[#allocation5 + $0x880] ss:$24 sps:$4 sm:$0xff]  }
 0x132   :  { %2830 = vmatpush1.bf16.msra.mxu0 %v3829_v35  ;;  %2659 = vmatprep.subr.bf16.mxu1 %v3834_v36  ;;  %v3924_v35 = vld [vmem:[#allocation5 + $0x8ac] ss:$24 sps:$4 sm:$0xff]  }
 0x133   :  { %2831 = vmatprep.subr.bf16.mxu0 %v3837_v37  ;;  %v3927_v36 = vld [vmem:[#allocation5 + $0x8b4] ss:$24 sps:$4 sm:$0xff]   ;;  %v3922_v37 = vld [vmem:[#allocation5 + $0x8a8] ss:$24 sps:$4 sm:$0xff]  }
 0x135   :  { %2660 = vmatpush1.bf16.msra.mxu1 %v3832_v38  ;;  %v3925_v38 = vld [vmem:[#allocation5 + $0x8b0] ss:$24 sps:$4 sm:$0xff]  }
 0x136   :  { %2832 = vmatpush1.bf16.msra.mxu0 %v3835_v39  ;;  %2672 = vmatprep.subr.bf16.mxu1 %v3840_v40  ;;  %v3930_v39 = vld [vmem:[#allocation5 + $0x8dc] ss:$24 sps:$4 sm:$0xff]  }
 0x137   :  { %2844 = vmatprep.subr.bf16.mxu0 %v3843_v41  ;;  %v3933_v40 = vld [vmem:[#allocation5 + $0x8e4] ss:$24 sps:$4 sm:$0xff]   ;;  %v3928_v41 = vld [vmem:[#allocation5 + $0x8d8] ss:$24 sps:$4 sm:$0xff]  }
 0x138   :  { %2662 = vmatmul.mubr.bf16.vlgmr.msra.gmra.mrb[4].mxu1 %v4233_v28 }
 0x139   :  { %2834 = vmatmul.mubr.bf16.vlgmr.msra.gmra.mrb[4].mxu0 %v4233_v28  ;;  %2673 = vmatpush1.bf16.msra.mxu1 %v3838_v42  ;;  %v3861_v28 = vld [vmem:[#allocation5 + $0x6a4] ss:$24 sps:$4 sm:$0xff]   ;;  %v3931_v42 = vld [vmem:[#allocation5 + $0x8e0] ss:$24 sps:$4 sm:$0xff]  }
 0x13a   :  { %2845 = vmatpush1.bf16.msra.mxu0 %v3841_v43  ;;  %2674 = vmatprep.subr.bf16.mxu1 %v3846_v44  ;;  %v3936_v43 = vld [vmem:[#allocation5 + $0x90c] ss:$24 sps:$4 sm:$0xff]  }
 0x13b   :  { %2846 = vmatprep.subr.bf16.mxu0 %v3849_v46  ;;  %2704 = vmatprep.mubr.bf16.mxu1 %v4218_v55  ;;  %v3939_v44 = vld [vmem:[#allocation5 + $0x914] ss:$24 sps:$4 sm:$0xff]   ;;  %v3934_v46 = vld [vmem:[#allocation5 + $0x908] ss:$24 sps:$4 sm:$0xff]  }
 0x13c   :  { %2876 = vmatprep.mubr.bf16.mxu0 %v4218_v55  ;;  %v3865_v55 = vld [vmem:[#allocation5 + $0x6d0] ss:$24 sps:$4 sm:$0xff]  }
 0x13d   :  { %2675 = vmatpush1.bf16.msra.mxu1 %v3844_v48  ;;  %v3937_v48 = vld [vmem:[#allocation5 + $0x910] ss:$24 sps:$4 sm:$0xff]  }
 0x13e   :  { %2847 = vmatpush1.bf16.msra.mxu0 %v3847_v49  ;;  %2676 = vmatprep.subr.bf16.mxu1 %v3852_v14  ;;  %v3942_v49 = vld [vmem:[#allocation5 + $0x93c] ss:$24 sps:$4 sm:$0xff]  }
 0x13f   :  { %2848 = vmatprep.subr.bf16.mxu0 %v3855_v52  ;;  %v3945_v14 = vld [vmem:[#allocation5 + $0x944] ss:$24 sps:$4 sm:$0xff]   ;;  %v3940_v52 = vld [vmem:[#allocation5 + $0x938] ss:$24 sps:$4 sm:$0xff]  }
 0x141   :  { %2677 = vmatpush1.bf16.msra.mxu1 %v3850_v50  ;;  %v3943_v50 = vld [vmem:[#allocation5 + $0x940] ss:$24 sps:$4 sm:$0xff]  }
 0x142   :  { %2849 = vmatpush1.bf16.msra.mxu0 %v3853_v51  ;;  %2678 = vmatprep.subr.bf16.mxu1 %v3858_v53  ;;  %v3948_v51 = vld [vmem:[#allocation5 + $0x96c] ss:$24 sps:$4 sm:$0xff]  }
 0x143   :  { %2850 = vmatprep.subr.bf16.mxu0 %v3861_v28  ;;  %v3951_v53 = vld [vmem:[#allocation5 + $0x974] ss:$24 sps:$4 sm:$0xff]   ;;  %v464_v28 = vlaneseq }
 0x145   :  { %2679 = vmatpush1.bf16.msra.mxu1 %v3856_v54  ;;  %v3946_v54 = vld [vmem:[#allocation5 + $0x968] ss:$24 sps:$4 sm:$0xff]  }
 0x146   :  { %2851 = vmatpush1.bf16.msra.mxu0 %v3859_v56  ;;  %2680 = vmatprep.subr.bf16.mxu1 %v3864_v45  ;;  %v3949_v56 = vld [vmem:[#allocation5 + $0x970] ss:$24 sps:$4 sm:$0xff]   ;;  %v3957_v45 = vld [vmem:[#allocation5 + $0x9a4] ss:$24 sps:$4 sm:$0xff]  }
 0x147   :  { %2852 = vmatprep.subr.bf16.mxu0 %v3867_v57  ;;  %v4253_v57 = vshrl.u32 %v464_v28, 7  ;;  %v4002_v28 = vld [vmem:[#allocation5 + $0xb1c] ss:$24 sps:$4 sm:$0xff]  }
 0x149   :  { %2681 = vmatpush1.bf16.msra.mxu1 %v3862_v58  ;;  %v3952_v58 = vld [vmem:[#allocation5 + $0x998] ss:$24 sps:$4 sm:$0xff]  }
 0x14a   :  { %2853 = vmatpush1.bf16.msra.mxu0 %v3865_v55  ;;  %2682 = vmatprep.subr.bf16.mxu1 %v3870_v59  ;;  %v3955_v55 = vld [vmem:[#allocation5 + $0x9a0] ss:$24 sps:$4 sm:$0xff]   ;;  %v3960_v59 = vld [vmem:[#allocation5 + $0x9cc] ss:$24 sps:$4 sm:$0xff]  }
 0x14b   :  { %2854 = vmatprep.subr.bf16.mxu0 %v3873_v60  ;;  %v3963_v60 = vld [vmem:[#allocation5 + $0x9d4] ss:$24 sps:$4 sm:$0xff]  }
 0x14d   :  { %2683 = vmatpush1.bf16.msra.mxu1 %v3868_v61  ;;  %v470_v61 = vsub.s32 1, %v4253_v57 }
 0x14e   :  { %2855 = vmatpush1.bf16.msra.mxu0 %v3871_v62  ;;  %2684 = vmatprep.subr.bf16.mxu1 %v3876_v63  ;;  %v3958_v62 = vld [vmem:[#allocation5 + $0x9c8] ss:$24 sps:$4 sm:$0xff]  }
 0x14f   :  { %2856 = vmatprep.subr.bf16.mxu0 %v3879_v0  ;;  %v3961_v63 = vld [vmem:[#allocation5 + $0x9d0] ss:$24 sps:$4 sm:$0xff]   ;;  %v4257_v0 = vld [vmem:[#allocation7] sm:$0x3f] }
 0x151   :  { %2685 = vmatpush1.bf16.msra.mxu1 %v3874_v1  ;;  %v3966_v1 = vld [vmem:[#allocation5 + $0x9fc] ss:$24 sps:$4 sm:$0xff]  }
 0x152   :  { %2857 = vmatpush1.bf16.msra.mxu0 %v3877_v2  ;;  %2686 = vmatprep.subr.bf16.mxu1 %v3882_v3  ;;  %v3969_v2 = vld [vmem:[#allocation5 + $0xa04] ss:$24 sps:$4 sm:$0xff]  }
 0x153   :  { %2858 = vmatprep.subr.bf16.mxu0 %v3885_v4  ;;  %v471_v4 = vrot.slane %v4257_v0, %v470_v61  ;;  %v4012_v61 = vld [vmem:[#allocation5 + $0xb78] ss:$24 sps:$4 sm:$0xff]  }
 0x155   :  { %2687 = vmatpush1.bf16.msra.mxu1 %v3880_v5  ;;  %v3964_v5 = vld [vmem:[#allocation5 + $0x9f8] ss:$24 sps:$4 sm:$0xff]  }
 0x156   :  { %2859 = vmatpush1.bf16.msra.mxu0 %v3883_v6  ;;  %2688 = vmatprep.subr.bf16.mxu1 %v3888_v7  ;;  %v3967_v6 = vld [vmem:[#allocation5 + $0xa00] ss:$24 sps:$4 sm:$0xff]   ;;  %v3972_v7 = vld [vmem:[#allocation5 + $0xa2c] ss:$24 sps:$4 sm:$0xff]  }
 0x157   :  { %2860 = vmatprep.subr.bf16.mxu0 %v3891_v8  ;;  %v3975_v8 = vld [vmem:[#allocation5 + $0xa34] ss:$24 sps:$4 sm:$0xff]  }
 0x159   :  { %2689 = vmatpush1.bf16.msra.mxu1 %v3886_v9 }
 0x15a   :  { %2861 = vmatpush1.bf16.msra.mxu0 %v3889_v10  ;;  %2690 = vmatprep.subr.bf16.mxu1 %v3894_v11 }
 0x15b   :  { %2862 = vmatprep.subr.bf16.mxu0 %v3897_v12 }
 0x15d   :  { %2691 = vmatpush1.bf16.msra.mxu1 %v3892_v13 }
 0x15e   :  { %2863 = vmatpush1.bf16.msra.mxu0 %v3895_v16  ;;  %2692 = vmatprep.subr.bf16.mxu1 %v3900_v17 }
 0x15f   :  { %2864 = vmatprep.subr.bf16.mxu0 %v3903_v18 }
 0x161   :  { %2693 = vmatpush1.bf16.msra.mxu1 %v3898_v19  ;;  %v3970_v19 = vld [vmem:[#allocation5 + $0xa28] ss:$24 sps:$4 sm:$0xff]  }
 0x162   :  { %2865 = vmatpush1.bf16.msra.mxu0 %v3901_v20  ;;  %2694 = vmatprep.subr.bf16.mxu1 %v3906_v21  ;;  %v3973_v20 = vld [vmem:[#allocation5 + $0xa30] ss:$24 sps:$4 sm:$0xff]  }
 0x163   :  { %2866 = vmatprep.subr.bf16.mxu0 %v3909_v22 }
 0x165   :  { %2695 = vmatpush1.bf16.msra.mxu1 %v3904_v23 }
 0x166   :  { %2867 = vmatpush1.bf16.msra.mxu0 %v3907_v24  ;;  %2696 = vmatprep.subr.bf16.mxu1 %v3912_v25  ;;  %v3978_v25 = vld [vmem:[#allocation5 + $0xa5c] ss:$24 sps:$4 sm:$0xff]  }
 0x167   :  { %2868 = vmatprep.subr.bf16.mxu0 %v3915_v26  ;;  %v3981_v26 = vld [vmem:[#allocation5 + $0xa64] ss:$24 sps:$4 sm:$0xff]  }
 0x169   :  { %2697 = vmatpush1.bf16.msra.mxu1 %v3910_v27 }
 0x16a   :  { %2869 = vmatpush1.bf16.msra.mxu0 %v3913_v30  ;;  %2698 = vmatprep.subr.bf16.mxu1 %v3918_v31 }
 0x16b   :  { %2870 = vmatprep.subr.bf16.mxu0 %v3921_v32 }
 0x16d   :  { %2699 = vmatpush1.bf16.msra.mxu1 %v3916_v33  ;;  %v3976_v33 = vld [vmem:[#allocation5 + $0xa58] ss:$24 sps:$4 sm:$0xff]  }
 0x16e   :  { %2871 = vmatpush1.bf16.msra.mxu0 %v3919_v34  ;;  %2700 = vmatprep.subr.bf16.mxu1 %v3924_v35  ;;  %v3979_v34 = vld [vmem:[#allocation5 + $0xa60] ss:$24 sps:$4 sm:$0xff]   ;;  %v3984_v35 = vld [vmem:[#allocation5 + $0xa8c] ss:$24 sps:$4 sm:$0xff]  }
 0x16f   :  { %2872 = vmatprep.subr.bf16.mxu0 %v3927_v36  ;;  %v3987_v36 = vld [vmem:[#allocation5 + $0xa94] ss:$24 sps:$4 sm:$0xff]  }
 0x171   :  { %2701 = vmatpush1.bf16.msra.mxu1 %v3922_v37  ;;  %v3982_v37 = vld [vmem:[#allocation5 + $0xa88] ss:$24 sps:$4 sm:$0xff]  }
 0x172   :  { %2873 = vmatpush1.bf16.msra.mxu0 %v3925_v38  ;;  %2702 = vmatprep.subr.bf16.mxu1 %v3930_v39  ;;  %v3985_v38 = vld [vmem:[#allocation5 + $0xa90] ss:$24 sps:$4 sm:$0xff]   ;;  %v3990_v39 = vld [vmem:[#allocation5 + $0xabc] ss:$24 sps:$4 sm:$0xff]  }
 0x173   :  { %2874 = vmatprep.subr.bf16.mxu0 %v3933_v40  ;;  %v3993_v40 = vld [vmem:[#allocation5 + $0xac4] ss:$24 sps:$4 sm:$0xff]  }
 0x175   :  { %2703 = vmatpush1.bf16.msra.mxu1 %v3928_v41  ;;  %v3988_v41 = vld [vmem:[#allocation5 + $0xab8] ss:$24 sps:$4 sm:$0xff]  }
 0x176   :  { %2875 = vmatpush1.bf16.msra.mxu0 %v3931_v42  ;;  %2715 = vmatprep.subr.bf16.mxu1 %v3936_v43  ;;  %v3991_v42 = vld [vmem:[#allocation5 + $0xac0] ss:$24 sps:$4 sm:$0xff]  }
 0x177   :  { %2887 = vmatprep.subr.bf16.mxu0 %v3939_v44  ;;  %v3996_v44 = vld [vmem:[#allocation5 + $0xaec] ss:$24 sps:$4 sm:$0xff]  }
 0x178   :  { %2705 = vmatmul.mubr.bf16.vlgmr.msra.gmra.mrb[4].mxu1 %v4223_v15 }
 0x179   :  { %2877 = vmatmul.mubr.bf16.vlgmr.msra.gmra.mrb[4].mxu0 %v4223_v15  ;;  %2716 = vmatpush1.bf16.msra.mxu1 %v3934_v46  ;;  %v3954_v15 = vld [vmem:[#allocation5 + $0x99c] ss:$24 sps:$4 sm:$0xff]  }
 0x17a   :  { %2888 = vmatpush1.bf16.msra.mxu0 %v3937_v48  ;;  %2717 = vmatprep.subr.bf16.mxu1 %v3942_v49  ;;  %v3999_v46 = vld [vmem:[#allocation5 + $0xaf4] ss:$24 sps:$4 sm:$0xff]  }
 0x17b   :  { %2889 = vmatprep.subr.bf16.mxu0 %v3945_v14  ;;  %2747 = vmatprep.mubr.bf16.mxu1 %v4229_v47 }
 0x17c   :  { %2919 = vmatprep.mubr.bf16.mxu0 %v4229_v47  ;;  %v466_v47 = vsub.s32 0, %v4253_v57 }
 0x17d   :  { %2718 = vmatpush1.bf16.msra.mxu1 %v3940_v52 }
 0x17e   :  { %2890 = vmatpush1.bf16.msra.mxu0 %v3943_v50  ;;  %2719 = vmatprep.subr.bf16.mxu1 %v3948_v51  ;;  %v467_v3 = vrot.slane %v4257_v0, %v466_v47  ;;  %v3994_v50 = vld [vmem:[#allocation5 + $0xae8] ss:$24 sps:$4 sm:$0xff]   ;;  %v4017_v47 = vld [vmem:[#allocation5 + $0xb84] ss:$24 sps:$4 sm:$0xff]  }
 0x17f   :  { %2891 = vmatprep.subr.bf16.mxu0 %v3951_v53  ;;  %v3997_v51 = vld [vmem:[#allocation5 + $0xaf0] ss:$24 sps:$4 sm:$0xff]  }
 0x181   :  { %2720 = vmatpush1.bf16.msra.mxu1 %v3946_v54  ;;  %v4005_v54 = vld [vmem:[#allocation5 + $0xb24] ss:$24 sps:$4 sm:$0xff]  }
 0x182   :  { %2892 = vmatpush1.bf16.msra.mxu0 %v3949_v56  ;;  %2721 = vmatprep.subr.bf16.mxu1 %v3954_v15  ;;  %v4000_v56 = vld [vmem:[#allocation5 + $0xb18] ss:$24 sps:$4 sm:$0xff]  }
 0x183   :  { %2893 = vmatprep.subr.bf16.mxu0 %v3957_v45  ;;  %v4003_v15 = vld [vmem:[#allocation5 + $0xb20] ss:$24 sps:$4 sm:$0xff]   ;;  %v4008_v45 = vld [vmem:[#allocation5 + $0xb4c] ss:$24 sps:$4 sm:$0xff]  }
 0x185   :  { %2722 = vmatpush1.bf16.msra.mxu1 %v3952_v58  ;;  %v4011_v58 = vld [vmem:[#allocation5 + $0xb54] ss:$24 sps:$4 sm:$0xff]  }
 0x186   :  { %2894 = vmatpush1.bf16.msra.mxu0 %v3955_v55  ;;  %2723 = vmatprep.subr.bf16.mxu1 %v3960_v59  ;;  %v4006_v55 = vld [vmem:[#allocation5 + $0xb48] ss:$24 sps:$4 sm:$0xff]  }
 0x187   :  { %2895 = vmatprep.subr.bf16.mxu0 %v3963_v60  ;;  %v4009_v59 = vld [vmem:[#allocation5 + $0xb50] ss:$24 sps:$4 sm:$0xff]   ;;  %v4014_v60 = vld [vmem:[#allocation5 + $0xb7c] ss:$24 sps:$4 sm:$0xff]  }
 0x189   :  { %2724 = vmatpush1.bf16.msra.mxu1 %v3958_v62  ;;  %v4015_v62 = vld [vmem:[#allocation5 + $0xb80] ss:$24 sps:$4 sm:$0xff]  }
 0x18a   :  { %2896 = vmatpush1.bf16.msra.mxu0 %v3961_v63  ;;  %2725 = vmatprep.subr.bf16.mxu1 %v3966_v1  ;;  %v4020_v63 = vld [vmem:[#allocation5 + $0xbac] ss:$24 sps:$4 sm:$0xff]  }
 0x18b   :  { %2897 = vmatprep.subr.bf16.mxu0 %v3969_v2  ;;  %v2491_v9 = vpop.f32.mrb[0].mxu1  ;;  %v4023_v1 = vld [vmem:[#allocation5 + $0xbb4] ss:$24 sps:$4 sm:$0xff]   ;;  %v4018_v2 = vld [vmem:[#allocation5 + $0xba8] ss:$24 sps:$4 sm:$0xff]  }
 0x18c   :  { %v2577_v10 = vpop.f32.mrb[0].mxu0  ;;  %v3398_v11 = vadd.f32 %v2491_v9, %v467_v3  ;;  %v2493_v12 = vpop.f32.mrb[1].mxu1  ;;  %v482_v9 = vsub.s32 4, %v4253_v57 }
 0x18d   :  { %v2579_v13 = vpop.f32.mrb[1].mxu0  ;;  %v3400_v16 = vadd.f32 %v2493_v12, %v471_v4  ;;  %v2495_v17 = vpop.f32.mrb[2].mxu1  ;;  %2726 = vmatpush1.bf16.msra.mxu1 %v3964_v5  ;;  %v4029_v5 = vld [vmem:[#allocation5 + $0xbe4] ss:$24 sps:$4 sm:$0xff]  }
 0x18e   :  { %v2581_v18 = vpop.f32.mrb[2].mxu0  ;;  %2898 = vmatpush1.bf16.msra.mxu0 %v3967_v6  ;;  %v3399_v21 = vadd.f32 %v3398_v11, %v2577_v10  ;;  %v3402_v22 = vadd.f32 %v2495_v17, %v467_v3  ;;  %v2497_v23 = vpop.f32.mrb[3].mxu1  ;;  %2727 = vmatprep.subr.bf16.mxu1 %v3972_v7  ;;  %v4021_v3 = vld [vmem:[#allocation5 + $0xbb0] ss:$24 sps:$4 sm:$0xff]   ;;  %v4027_v7 = vld [vmem:[#allocation5 + $0xbe0] ss:$24 sps:$4 sm:$0xff]  }
 0x18f   :  { %v2583_v24 = vpop.f32.mrb[3].mxu0  ;;  %2899 = vmatprep.subr.bf16.mxu0 %v3975_v8  ;;  %v3401_v27 = vadd.f32 %v3400_v16, %v2579_v13  ;;  %v3404_v30 = vadd.f32 %v2497_v23, %v471_v4  ;;  %v4026_v4 = vld [vmem:[#allocation5 + $0xbdc] ss:$24 sps:$4 sm:$0xff]   ;;  %v4024_v6 = vld [vmem:[#allocation5 + $0xbd8] ss:$24 sps:$4 sm:$0xff]   ;;  %v474_v8 = vsub.s32 2, %v4253_v57  ;;  %v483_v13 = vrot.slane %v4257_v0, %v482_v9 }
 0x190   :  { %4030 = vtanh.f32 %v3399_v21  ;;  %v3403_v31 = vadd.f32 %v3402_v22, %v2581_v18  ;;  %v478_v10 = vsub.s32 3, %v4253_v57  ;;  %v486_v11 = vsub.s32 5, %v4253_v57 }
 0x191   :  { %4032 = vtanh.f32 %v3401_v27  ;;  %v3405_v32 = vadd.f32 %v3404_v30, %v2583_v24  ;;  %2728 = vmatpush1.bf16.msra.mxu1 %v3970_v19  ;;  %v475_v12 = vrot.slane %v4257_v0, %v474_v8 }
 0x192   :  { %2900 = vmatpush1.bf16.msra.mxu0 %v3973_v20  ;;  %4034 = vtanh.f32 %v3403_v31  ;;  %2729 = vmatprep.subr.bf16.mxu1 %v3978_v25  ;;  %v479_v16 = vrot.slane %v4257_v0, %v478_v10  ;;  %v487_v17 = vrot.slane %v4257_v0, %v486_v11 }
 0x193   :  { %2901 = vmatprep.subr.bf16.mxu0 %v3981_v26  ;;  %4036 = vtanh.f32 %v3405_v32 }
 0x195   :  { %2730 = vmatpush1.bf16.msra.mxu1 %v3976_v33 }
 0x196   :  { %2902 = vmatpush1.bf16.msra.mxu0 %v3979_v34  ;;  %2731 = vmatprep.subr.bf16.mxu1 %v3984_v35 }
 0x197   :  { %2903 = vmatprep.subr.bf16.mxu0 %v3987_v36 }
 0x199   :  { %2732 = vmatpush1.bf16.msra.mxu1 %v3982_v37 }
 0x19a   :  { %2904 = vmatpush1.bf16.msra.mxu0 %v3985_v38  ;;  %v4031_v43 = vpop.eup %4030  ;;  %2733 = vmatprep.subr.bf16.mxu1 %v3990_v39 }
 0x19b   :  { %2905 = vmatprep.subr.bf16.mxu0 %v3993_v40  ;;  %v4033_v48 = vpop.eup %4032 }
 0x19c   :  { %v4035_v49 = vpop.eup %4034  ;;  %v3392_v14 = vpack.c.bf16 %v4033_v48, %v4031_v43 }
 0x19d   :  { %v4037_v52 = vpop.eup %4036  ;;  %2734 = vmatpush1.bf16.msra.mxu1 %v3988_v41 }
 0x19e   :  { %2906 = vmatpush1.bf16.msra.mxu0 %v3991_v42  ;;  %2978 = vst [vmem:[#allocation8] sm:$0xff] %v3392_v14  ;;  %v3395_v53 = vpack.c.bf16 %v4037_v52, %v4035_v49  ;;  %2735 = vmatprep.subr.bf16.mxu1 %v3996_v44 }
 0x19f   :  { %2907 = vmatprep.subr.bf16.mxu0 %v3999_v46 }
 0x1a0   :  { %2981 = vst [vmem:[#allocation8 + $0x18] sm:$0xff] %v3395_v53 }
 0x1a1   :  { %2736 = vmatpush1.bf16.msra.mxu1 %v3994_v50 }
 0x1a2   :  { %2908 = vmatpush1.bf16.msra.mxu0 %v3997_v51  ;;  %2737 = vmatprep.subr.bf16.mxu1 %v4002_v28 }
 0x1a3   :  { %2909 = vmatprep.subr.bf16.mxu0 %v4005_v54 }
 0x1a5   :  { %2738 = vmatpush1.bf16.msra.mxu1 %v4000_v56 }
 0x1a6   :  { %2910 = vmatpush1.bf16.msra.mxu0 %v4003_v15  ;;  %2739 = vmatprep.subr.bf16.mxu1 %v4008_v45 }
 0x1a7   :  { %2911 = vmatprep.subr.bf16.mxu0 %v4011_v58 }
 0x1a9   :  { %2740 = vmatpush1.bf16.msra.mxu1 %v4006_v55 }
 0x1aa   :  { %2912 = vmatpush1.bf16.msra.mxu0 %v4009_v59  ;;  %2741 = vmatprep.subr.bf16.mxu1 %v4014_v60 }
 0x1ab   :  { %2913 = vmatprep.subr.bf16.mxu0 %v4017_v47 }
 0x1ad   :  { %2742 = vmatpush1.bf16.msra.mxu1 %v4012_v61 }
 0x1ae   :  { %2914 = vmatpush1.bf16.msra.mxu0 %v4015_v62  ;;  %2743 = vmatprep.subr.bf16.mxu1 %v4020_v63 }
 0x1af   :  { %2915 = vmatprep.subr.bf16.mxu0 %v4023_v1 }
 0x1b1   :  { %2744 = vmatpush1.bf16.msra.mxu1 %v4018_v2 }
 0x1b2   :  { %2916 = vmatpush1.bf16.msra.mxu0 %v4021_v3  ;;  %2745 = vmatprep.subr.bf16.mxu1 %v4026_v4 }
 0x1b3   :  { %2917 = vmatprep.subr.bf16.mxu0 %v4029_v5 }
 0x1b5   :  { %2746 = vmatpush1.bf16.msra.mxu1 %v4024_v6 }
 0x1b6   :  { %2918 = vmatpush1.bf16.msra.mxu0 %v4027_v7 }
 0x1b8   :  { %2748 = vmatmul.mubr.bf16.vlgmr.msra.gmra.mrb[4].mxu1 %v4235_v29 }
 0x1b9   :  { %2920 = vmatmul.mubr.bf16.vlgmr.msra.gmra.mrb[4].mxu0 %v4235_v29 }
 0x28b   :  { %v2749_v18 = vpop.f32.mrb[4].mxu1 }
 0x28c   :  { %v2921_v19 = vpop.f32.mrb[4].mxu0  ;;  %v3406_v20 = vadd.f32 %v2749_v18, %v475_v12  ;;  %v2751_v21 = vpop.f32.mrb[5].mxu1 }
 0x28d   :  { %v3410_v29 = vadd.f32 %v2921_v19, %v483_v13  ;;  %v2923_v22 = vpop.f32.mrb[5].mxu0  ;;  %v3407_v23 = vadd.f32 %v2751_v21, %v479_v16  ;;  %v2753_v25 = vpop.f32.mrb[6].mxu1 }
 0x28e   :  { %v3411_v24 = vadd.f32 %v2923_v22, %v487_v17  ;;  %v2925_v26 = vpop.f32.mrb[6].mxu0  ;;  %4038 = vtanh.f32 %v3406_v20  ;;  %v3408_v57 = vadd.f32 %v2753_v25, %v475_v12  ;;  %v2755_v27 = vpop.f32.mrb[7].mxu1 }
 0x28f   :  { %v2927_v30 = vpop.f32.mrb[7].mxu0  ;;  %4040 = vtanh.f32 %v3410_v29  ;;  %v3412_v31 = vadd.f32 %v2925_v26, %v483_v13  ;;  %v3409_v32 = vadd.f32 %v2755_v27, %v479_v16 }
 0x290   :  { %4042 = vtanh.f32 %v3407_v23  ;;  %v3413_v0 = vadd.f32 %v2927_v30, %v487_v17 }
 0x291   :  { %4044 = vtanh.f32 %v3411_v24 }
 0x292   :  { %4046 = vtanh.f32 %v3408_v57 }
 0x293   :  { %4048 = vtanh.f32 %v3412_v31 }
 0x294   :  { %4050 = vtanh.f32 %v3409_v32 }
 0x295   :  { %4052 = vtanh.f32 %v3413_v0 }
 0x298   :  { %v4039_v33 = vpop.eup %4038 }
 0x299   :  { %v4041_v34 = vpop.eup %4040 }
 0x29a   :  { %v4043_v35 = vpop.eup %4042 }
 0x29b   :  { %v4045_v36 = vpop.eup %4044  ;;  %v3393_v37 = vpack.c.bf16 %v4043_v35, %v4039_v33 }
 0x29c   :  { %v4047_v38 = vpop.eup %4046  ;;  %v3394_v39 = vpack.c.bf16 %v4045_v36, %v4041_v34 }
 0x29d   :  { %v4049_v40 = vpop.eup %4048  ;;  %2979 = vst [vmem:[#allocation8 + $0x8] sm:$0xff] %v3393_v37 }
 0x29e   :  { %v4051_v41 = vpop.eup %4050  ;;  %2980 = vst [vmem:[#allocation8 + $0x10] sm:$0xff] %v3394_v39 }
 0x29f   :  { %v4053_v42 = vpop.eup %4052  ;;  %v3396_v43 = vpack.c.bf16 %v4051_v41, %v4047_v38 }
 0x2a0   :  { %v3397_v44 = vpack.c.bf16 %v4053_v42, %v4049_v40 }
 0x2a1   :  { %2982 = vst [vmem:[#allocation8 + $0x20] sm:$0xff] %v3396_v43 }
 0x2a2   :  { %2983 = vst [vmem:[#allocation8 + $0x28] sm:$0xff] %v3397_v44 }
 0x2a3   :  { %4131 = shalt.err (!%p4128_p0)
}
 0x2a4   :  { %s4132_s29 = scalar_lea.hbm %s4289_s3, 768 }
 0x2a5   :  { %p4133_p1 = scmp.ne.s32.totalorder %s4289_s3, %s4132_s29  ;;  %p4136_p2 = scmp.lt.u32.totalorder %s4132_s29, %s4289_s3 }
 0x2a7   :  { %p4138_p3 = pnand %p4136_p2, %p4133_p1 }
 0x2a9   :  { %4141 = shalt.err (!%p4138_p3)
}
 0x2aa   :  { %2995 = dma.vmem_to_hbm [thread:$0]  %s2990_s25, 768, %s4289_s3, [#allocation4], %s4149_s22, %s4149_s22, %s4150_s23  }
 0x2ab   :  { %4146 = dma.done.wait [#allocation4], 768  }
 0x2ac   :  { %4147 = vsyncadd [#allocation4], 4294966528 }
 0x2ad   :  { %2999 = vsyncpa [#allocation3], 1 }
 0x2ae   :  { %3000 = vsyncpa [#allocation6], 1 }
 0x2af   :  { %3001 = vsyncpa [#allocation4], 1 }

</bundles_post_ra>
